<compile_context>
chip_gen: v7x
topology: tpu7x:2x2x1
jax: 0.10.0
libtpu: 0.0.40
codegen_flags: <defaults>
</compile_context>

<pallas_src>
import functools

import jax
import jax.numpy as jnp
from jax.experimental import pallas as pl
from jax.experimental.pallas import tpu as pltpu


def autopad(k, p=None, d=1):
    """Pad to 'same' shape outputs (int kernel sizes, matching the PyTorch helper)."""
    if d > 1:
        k = d * (k - 1) + 1
    if p is None:
        p = k // 2
    return p


# ---------------------------------------------------------------------------
# Fused conv + BN + SiLU kernel ("tap accumulation" on a flattened image).
#
# The zero-padded NHWC image is flattened to (Hp*Wp, Cin) rows. For stride 1,
# output pixel m = oh*Wp + ow at kernel tap (i, j) reads input row
# m + (i*Wp + j)*d, so every tap is a single contiguous row window of the
# VMEM-resident image and the conv is a sum of kh*kw matmuls. Rows with
# ow >= Wo are junk "wrap" rows; they are sliced off in the wrapper (that
# slice fuses with the final NHWC->NCHW transpose, so no extra HBM pass).
# ---------------------------------------------------------------------------
def _conv_bn_act_kernel(x_ref, w_ref, scale_ref, bias_ref, o_ref, *,
                        kh, kw, dil, wp, bm, act):
    cout = o_ref.shape[-1]
    acc = jnp.zeros((bm, cout), jnp.float32)
    # Static unroll over the kh*kw taps; all windows stay in VMEM.
    for i in range(kh):
        for j in range(kw):
            off = (i * wp + j) * dil
            lhs = x_ref[off:off + bm, :].astype(jnp.bfloat16)   # (bm, Cin)
            acc = acc + jnp.dot(lhs, w_ref[i * kw + j],
                                preferred_element_type=jnp.float32)
    y = acc * scale_ref[...] + bias_ref[...]                    # folded BN (f32)
    if act:
        # SiLU: exp + approximate reciprocal both run on the EUP slot.
        y = y * pl.reciprocal(1.0 + jnp.exp(-y), approx=True)
    o_ref[...] = y


def conv_forward(x, weight, bn_params, *, k=None, s=1, p=None, g=1, d=1,
                 act=True, eps=1e-5):
    """Forward of `Conv`: SiLU(BN(Conv2d(x, w, stride=s, pad=autopad, dil=d))).

    x: (B, c1, H, W) NCHW float32, weight: (c2, c1, kh, kw), bn_params:
    (gamma, beta, running_mean, running_var). Returns NCHW float32.
    """
    B, c1, H, W = x.shape
    c2, c1g, kh, kw = weight.shape
    # TODO(synk): grouped conv (g > 1) needs per-group block matmuls; not implemented.
    assert g == 1 and c1g == c1, "grouped conv not implemented"
    # TODO(synk): only SiLU (act=True) / identity (act=False) activations supported.
    if k is None:
        k = kh
    pad = autopad(k, p, d)

    # Dense (stride-1) output extent; stride > 1 is handled by subsampling the
    # dense result below.
    # TODO(synk): dedicated strided kernel to avoid the s^2 compute waste for s > 1.
    Ho1 = H + 2 * pad - d * (kh - 1)
    Wo1 = W + 2 * pad - d * (kw - 1)
    Hp, Wp = H + 2 * pad, W + 2 * pad
    m_ext = (Ho1 - 1) * Wp + Wo1            # valid extended (flat) output rows
    bm = ((m_ext + 7) // 8) * 8             # sublane-aligned kernel block rows
    n_rows_in = Hp * Wp + (bm - m_ext)      # flat input rows (+ slack for bm)

    # NCHW -> padded NHWC -> flattened rows (only layout glue needed for the
    # PyTorch I/O layout; XLA fuses the pad with the transpose).
    xr = jnp.transpose(x, (0, 2, 3, 1)).astype(jnp.float32)
    xr = jnp.pad(xr, ((0, 0), (pad, pad), (pad, pad), (0, 0)))
    xr = xr.reshape(B, Hp * Wp, c1)
    xr = jnp.pad(xr, ((0, 0), (0, n_rows_in - Hp * Wp), (0, 0)))

    # Per-tap (Cin, Cout) weight matrices, bf16 for the MXU.
    wt = jnp.transpose(weight, (2, 3, 1, 0)).reshape(kh * kw, c1, c2)
    wt = wt.astype(jnp.bfloat16)

    # Eval-mode BatchNorm folded into per-output-channel scale / bias (f32).
    gamma, beta, mean, var = bn_params
    scale = (gamma / jnp.sqrt(var + eps)).astype(jnp.float32)
    bias = (beta - mean * scale).astype(jnp.float32)

    kernel = functools.partial(_conv_bn_act_kernel, kh=kh, kw=kw, dil=d,
                               wp=Wp, bm=bm, act=bool(act))
    out = pl.pallas_call(
        kernel,
        out_shape=jax.ShapeDtypeStruct((B, bm, c2), jnp.float32),
        grid=(B,),
        in_specs=[
            pl.BlockSpec((None, n_rows_in, c1), lambda b: (b, 0, 0)),
            pl.BlockSpec((kh * kw, c1, c2), lambda b: (0, 0, 0)),
            pl.BlockSpec((1, c2), lambda b: (0, 0)),
            pl.BlockSpec((1, c2), lambda b: (0, 0)),
        ],
        out_specs=pl.BlockSpec((None, bm, c2), lambda b: (b, 0, 0)),
        compiler_params=pltpu.CompilerParams(
            dimension_semantics=("parallel",)),
    )(xr, wt, scale.reshape(1, c2), bias.reshape(1, c2))
    # TODO(synk): for large images add an output-row grid axis with halo'd
    # input windows so per-step blocks stay inside v7x's 64 MiB VMEM budget.

    # Drop the junk wrap columns, apply stride, go back to NCHW. All of this
    # fuses with the (required) NHWC->NCHW transpose into a single pass.
    rows = Ho1 * Wp
    if bm < rows:
        out = jnp.pad(out, ((0, 0), (0, rows - bm), (0, 0)))
    else:
        out = out[:, :rows, :]
    out = out.reshape(B, Ho1, Wp, c2)[:, ::s, 0:Wo1:s, :]
    return jnp.transpose(out, (0, 3, 1, 2))


if __name__ == "__main__":
    key = jax.random.PRNGKey(0)
    kx, kw_, k1, k2, k3, k4 = jax.random.split(key, 6)

    B, c1, c2, k, s = 2, 4, 8, 3, 1
    H = W = 16
    x = jax.random.normal(kx, (B, c1, H, W), dtype=jnp.float32)
    weight = 0.1 * jax.random.normal(kw_, (c2, c1, k, k), dtype=jnp.float32)
    gamma = 1.0 + 0.1 * jax.random.normal(k1, (c2,), jnp.float32)
    beta = 0.05 * jax.random.normal(k2, (c2,), jnp.float32)
    mean = 0.05 * jax.random.normal(k3, (c2,), jnp.float32)
    var = 1.0 + 0.1 * jax.random.uniform(k4, (c2,), jnp.float32)
    bn = (gamma, beta, mean, var)

    fwd = jax.jit(functools.partial(conv_forward, k=k, s=s))
    out = jax.block_until_ready(fwd(x, weight, bn))

    # Reference: plain-XLA conv + folded eval-mode BN + SiLU.
    pad = autopad(k)
    ref = jax.lax.conv_general_dilated(
        x, weight, window_strides=(s, s), padding=[(pad, pad), (pad, pad)],
        dimension_numbers=("NCHW", "OIHW", "NCHW"))
    sc = (gamma / jnp.sqrt(var + 1e-5)).reshape(1, c2, 1, 1)
    bi = beta.reshape(1, c2, 1, 1) - mean.reshape(1, c2, 1, 1) * sc
    ref = ref * sc + bi
    ref = ref * jax.nn.sigmoid(ref)

    assert out.shape == ref.shape == (B, c2, H, W), out.shape
    assert bool(jnp.all(jnp.isfinite(out)))
    assert float(jnp.max(jnp.abs(out - ref))) < 5e-2
    print("KERNEL_OK")
</pallas_src>

<mosaic_0001>
module attributes {stable_mosaic.version = 11 : i64} {
  func.func @_conv_bn_act_kernel(%arg0: i32, %arg1: memref<1x326x4xf32, #tpu.memory_space<vmem>>, %arg2: memref<9x4x8xbf16, #tpu.memory_space<vmem>>, %arg3: memref<1x8xf32, #tpu.memory_space<vmem>>, %arg4: memref<1x8xf32, #tpu.memory_space<vmem>>, %arg5: memref<1x288x8xf32, #tpu.memory_space<vmem>>) attributes {dimension_semantics = [#tpu.dimension_semantics<parallel>], iteration_bounds = array<i64: 2>, scalar_prefetch = 0 : i64, scratch_operands = 0 : i64, tpu.core_type = #tpu.core_type<tc>, window_params = [{transform_indices = @transform_0, window_bounds = array<i64: 1, 326, 4>}, {pipeline_mode = #tpu.pipeline_mode<synchronous>, transform_indices = @transform_1, window_bounds = array<i64: 9, 4, 8>}, {pipeline_mode = #tpu.pipeline_mode<synchronous>, transform_indices = @transform_2, window_bounds = array<i64: 1, 8>}, {pipeline_mode = #tpu.pipeline_mode<synchronous>, transform_indices = @transform_3, window_bounds = array<i64: 1, 8>}, {transform_indices = @transform_4, window_bounds = array<i64: 1, 288, 8>}]} {
    %cst = arith.constant 0.000000e+00 : f32
    %0 = vector.broadcast %cst : f32 to vector<288x8xf32>
    %c0 = arith.constant 0 : index
    %c0_0 = arith.constant 0 : index
    %c0_1 = arith.constant 0 : index
    %1 = vector.load %arg1[%c0, %c0_0, %c0_1] : memref<1x326x4xf32, #tpu.memory_space<vmem>>, vector<1x288x4xf32>
    %2 = vector.shape_cast %1 : vector<1x288x4xf32> to vector<288x4xf32>
    %3 = arith.truncf %2 : vector<288x4xf32> to vector<288x4xbf16>
    %c0_2 = arith.constant 0 : index
    %c0_3 = arith.constant 0 : index
    %c0_4 = arith.constant 0 : index
    %4 = vector.load %arg2[%c0_2, %c0_3, %c0_4] : memref<9x4x8xbf16, #tpu.memory_space<vmem>>, vector<1x4x8xbf16>
    %5 = vector.shape_cast %4 : vector<1x4x8xbf16> to vector<4x8xbf16>
    %cst_5 = arith.constant dense<0.000000e+00> : vector<288x8xf32>
    %6 = tpu.matmul %3, %5, %cst_5 {dimension_numbers = #tpu.dot_dimension_numbers<[1], [0], [0], [1], [0, 0, 1, 1], [], []>} : vector<288x4xbf16>, vector<4x8xbf16>, vector<288x8xf32> -> vector<288x8xf32>
    %7 = arith.addf %0, %6 : vector<288x8xf32>
    %c0_6 = arith.constant 0 : index
    %c1 = arith.constant 1 : index
    %c0_7 = arith.constant 0 : index
    %8 = vector.load %arg1[%c0_6, %c1, %c0_7] : memref<1x326x4xf32, #tpu.memory_space<vmem>>, vector<1x288x4xf32>
    %9 = vector.shape_cast %8 : vector<1x288x4xf32> to vector<288x4xf32>
    %10 = arith.truncf %9 : vector<288x4xf32> to vector<288x4xbf16>
    %c1_8 = arith.constant 1 : index
    %c0_9 = arith.constant 0 : index
    %c0_10 = arith.constant 0 : index
    %11 = vector.load %arg2[%c1_8, %c0_9, %c0_10] : memref<9x4x8xbf16, #tpu.memory_space<vmem>>, vector<1x4x8xbf16>
    %12 = vector.shape_cast %11 : vector<1x4x8xbf16> to vector<4x8xbf16>
    %cst_11 = arith.constant dense<0.000000e+00> : vector<288x8xf32>
    %13 = tpu.matmul %10, %12, %cst_11 {dimension_numbers = #tpu.dot_dimension_numbers<[1], [0], [0], [1], [0, 0, 1, 1], [], []>} : vector<288x4xbf16>, vector<4x8xbf16>, vector<288x8xf32> -> vector<288x8xf32>
    %14 = arith.addf %7, %13 : vector<288x8xf32>
    %c0_12 = arith.constant 0 : index
    %c2 = arith.constant 2 : index
    %c0_13 = arith.constant 0 : index
    %15 = vector.load %arg1[%c0_12, %c2, %c0_13] : memref<1x326x4xf32, #tpu.memory_space<vmem>>, vector<1x288x4xf32>
    %16 = vector.shape_cast %15 : vector<1x288x4xf32> to vector<288x4xf32>
    %17 = arith.truncf %16 : vector<288x4xf32> to vector<288x4xbf16>
    %c2_14 = arith.constant 2 : index
    %c0_15 = arith.constant 0 : index
    %c0_16 = arith.constant 0 : index
    %18 = vector.load %arg2[%c2_14, %c0_15, %c0_16] : memref<9x4x8xbf16, #tpu.memory_space<vmem>>, vector<1x4x8xbf16>
    %19 = vector.shape_cast %18 : vector<1x4x8xbf16> to vector<4x8xbf16>
    %cst_17 = arith.constant dense<0.000000e+00> : vector<288x8xf32>
    %20 = tpu.matmul %17, %19, %cst_17 {dimension_numbers = #tpu.dot_dimension_numbers<[1], [0], [0], [1], [0, 0, 1, 1], [], []>} : vector<288x4xbf16>, vector<4x8xbf16>, vector<288x8xf32> -> vector<288x8xf32>
    %21 = arith.addf %14, %20 : vector<288x8xf32>
    %c0_18 = arith.constant 0 : index
    %c18 = arith.constant 18 : index
    %c0_19 = arith.constant 0 : index
    %22 = vector.load %arg1[%c0_18, %c18, %c0_19] : memref<1x326x4xf32, #tpu.memory_space<vmem>>, vector<1x288x4xf32>
    %23 = vector.shape_cast %22 : vector<1x288x4xf32> to vector<288x4xf32>
    %24 = arith.truncf %23 : vector<288x4xf32> to vector<288x4xbf16>
    %c3 = arith.constant 3 : index
    %c0_20 = arith.constant 0 : index
    %c0_21 = arith.constant 0 : index
    %25 = vector.load %arg2[%c3, %c0_20, %c0_21] : memref<9x4x8xbf16, #tpu.memory_space<vmem>>, vector<1x4x8xbf16>
    %26 = vector.shape_cast %25 : vector<1x4x8xbf16> to vector<4x8xbf16>
    %cst_22 = arith.constant dense<0.000000e+00> : vector<288x8xf32>
    %27 = tpu.matmul %24, %26, %cst_22 {dimension_numbers = #tpu.dot_dimension_numbers<[1], [0], [0], [1], [0, 0, 1, 1], [], []>} : vector<288x4xbf16>, vector<4x8xbf16>, vector<288x8xf32> -> vector<288x8xf32>
    %28 = arith.addf %21, %27 : vector<288x8xf32>
    %c0_23 = arith.constant 0 : index
    %c19 = arith.constant 19 : index
    %c0_24 = arith.constant 0 : index
    %29 = vector.load %arg1[%c0_23, %c19, %c0_24] : memref<1x326x4xf32, #tpu.memory_space<vmem>>, vector<1x288x4xf32>
    %30 = vector.shape_cast %29 : vector<1x288x4xf32> to vector<288x4xf32>
    %31 = arith.truncf %30 : vector<288x4xf32> to vector<288x4xbf16>
    %c4 = arith.constant 4 : index
    %c0_25 = arith.constant 0 : index
    %c0_26 = arith.constant 0 : index
    %32 = vector.load %arg2[%c4, %c0_25, %c0_26] : memref<9x4x8xbf16, #tpu.memory_space<vmem>>, vector<1x4x8xbf16>
    %33 = vector.shape_cast %32 : vector<1x4x8xbf16> to vector<4x8xbf16>
    %cst_27 = arith.constant dense<0.000000e+00> : vector<288x8xf32>
    %34 = tpu.matmul %31, %33, %cst_27 {dimension_numbers = #tpu.dot_dimension_numbers<[1], [0], [0], [1], [0, 0, 1, 1], [], []>} : vector<288x4xbf16>, vector<4x8xbf16>, vector<288x8xf32> -> vector<288x8xf32>
    %35 = arith.addf %28, %34 : vector<288x8xf32>
    %c0_28 = arith.constant 0 : index
    %c20 = arith.constant 20 : index
    %c0_29 = arith.constant 0 : index
    %36 = vector.load %arg1[%c0_28, %c20, %c0_29] : memref<1x326x4xf32, #tpu.memory_space<vmem>>, vector<1x288x4xf32>
    %37 = vector.shape_cast %36 : vector<1x288x4xf32> to vector<288x4xf32>
    %38 = arith.truncf %37 : vector<288x4xf32> to vector<288x4xbf16>
    %c5 = arith.constant 5 : index
    %c0_30 = arith.constant 0 : index
    %c0_31 = arith.constant 0 : index
    %39 = vector.load %arg2[%c5, %c0_30, %c0_31] : memref<9x4x8xbf16, #tpu.memory_space<vmem>>, vector<1x4x8xbf16>
    %40 = vector.shape_cast %39 : vector<1x4x8xbf16> to vector<4x8xbf16>
    %cst_32 = arith.constant dense<0.000000e+00> : vector<288x8xf32>
    %41 = tpu.matmul %38, %40, %cst_32 {dimension_numbers = #tpu.dot_dimension_numbers<[1], [0], [0], [1], [0, 0, 1, 1], [], []>} : vector<288x4xbf16>, vector<4x8xbf16>, vector<288x8xf32> -> vector<288x8xf32>
    %42 = arith.addf %35, %41 : vector<288x8xf32>
    %c0_33 = arith.constant 0 : index
    %c36 = arith.constant 36 : index
    %c0_34 = arith.constant 0 : index
    %43 = vector.load %arg1[%c0_33, %c36, %c0_34] : memref<1x326x4xf32, #tpu.memory_space<vmem>>, vector<1x288x4xf32>
    %44 = vector.shape_cast %43 : vector<1x288x4xf32> to vector<288x4xf32>
    %45 = arith.truncf %44 : vector<288x4xf32> to vector<288x4xbf16>
    %c6 = arith.constant 6 : index
    %c0_35 = arith.constant 0 : index
    %c0_36 = arith.constant 0 : index
    %46 = vector.load %arg2[%c6, %c0_35, %c0_36] : memref<9x4x8xbf16, #tpu.memory_space<vmem>>, vector<1x4x8xbf16>
    %47 = vector.shape_cast %46 : vector<1x4x8xbf16> to vector<4x8xbf16>
    %cst_37 = arith.constant dense<0.000000e+00> : vector<288x8xf32>
    %48 = tpu.matmul %45, %47, %cst_37 {dimension_numbers = #tpu.dot_dimension_numbers<[1], [0], [0], [1], [0, 0, 1, 1], [], []>} : vector<288x4xbf16>, vector<4x8xbf16>, vector<288x8xf32> -> vector<288x8xf32>
    %49 = arith.addf %42, %48 : vector<288x8xf32>
    %c0_38 = arith.constant 0 : index
    %c37 = arith.constant 37 : index
    %c0_39 = arith.constant 0 : index
    %50 = vector.load %arg1[%c0_38, %c37, %c0_39] : memref<1x326x4xf32, #tpu.memory_space<vmem>>, vector<1x288x4xf32>
    %51 = vector.shape_cast %50 : vector<1x288x4xf32> to vector<288x4xf32>
    %52 = arith.truncf %51 : vector<288x4xf32> to vector<288x4xbf16>
    %c7 = arith.constant 7 : index
    %c0_40 = arith.constant 0 : index
    %c0_41 = arith.constant 0 : index
    %53 = vector.load %arg2[%c7, %c0_40, %c0_41] : memref<9x4x8xbf16, #tpu.memory_space<vmem>>, vector<1x4x8xbf16>
    %54 = vector.shape_cast %53 : vector<1x4x8xbf16> to vector<4x8xbf16>
    %cst_42 = arith.constant dense<0.000000e+00> : vector<288x8xf32>
    %55 = tpu.matmul %52, %54, %cst_42 {dimension_numbers = #tpu.dot_dimension_numbers<[1], [0], [0], [1], [0, 0, 1, 1], [], []>} : vector<288x4xbf16>, vector<4x8xbf16>, vector<288x8xf32> -> vector<288x8xf32>
    %56 = arith.addf %49, %55 : vector<288x8xf32>
    %c0_43 = arith.constant 0 : index
    %c38 = arith.constant 38 : index
    %c0_44 = arith.constant 0 : index
    %57 = vector.load %arg1[%c0_43, %c38, %c0_44] : memref<1x326x4xf32, #tpu.memory_space<vmem>>, vector<1x288x4xf32>
    %58 = vector.shape_cast %57 : vector<1x288x4xf32> to vector<288x4xf32>
    %59 = arith.truncf %58 : vector<288x4xf32> to vector<288x4xbf16>
    %c8 = arith.constant 8 : index
    %c0_45 = arith.constant 0 : index
    %c0_46 = arith.constant 0 : index
    %60 = vector.load %arg2[%c8, %c0_45, %c0_46] : memref<9x4x8xbf16, #tpu.memory_space<vmem>>, vector<1x4x8xbf16>
    %61 = vector.shape_cast %60 : vector<1x4x8xbf16> to vector<4x8xbf16>
    %cst_47 = arith.constant dense<0.000000e+00> : vector<288x8xf32>
    %62 = tpu.matmul %59, %61, %cst_47 {dimension_numbers = #tpu.dot_dimension_numbers<[1], [0], [0], [1], [0, 0, 1, 1], [], []>} : vector<288x4xbf16>, vector<4x8xbf16>, vector<288x8xf32> -> vector<288x8xf32>
    %63 = arith.addf %56, %62 : vector<288x8xf32>
    %c0_48 = arith.constant 0 : index
    %c0_49 = arith.constant 0 : index
    %64 = vector.load %arg3[%c0_48, %c0_49] : memref<1x8xf32, #tpu.memory_space<vmem>>, vector<1x8xf32>
    %65 = vector.broadcast %64 : vector<1x8xf32> to vector<288x8xf32>
    %66 = arith.mulf %63, %65 : vector<288x8xf32>
    %c0_50 = arith.constant 0 : index
    %c0_51 = arith.constant 0 : index
    %67 = vector.load %arg4[%c0_50, %c0_51] : memref<1x8xf32, #tpu.memory_space<vmem>>, vector<1x8xf32>
    %68 = vector.broadcast %67 : vector<1x8xf32> to vector<288x8xf32>
    %69 = arith.addf %66, %68 : vector<288x8xf32>
    %cst_52 = arith.constant 0.000000e+00 : f32
    %70 = vector.broadcast %cst_52 : f32 to vector<288x8xf32>
    %71 = arith.subf %70, %69 : vector<288x8xf32>
    %72 = math.exp %71 : vector<288x8xf32>
    %cst_53 = arith.constant 1.000000e+00 : f32
    %73 = vector.broadcast %cst_53 : f32 to vector<288x8xf32>
    %74 = arith.addf %73, %72 : vector<288x8xf32>
    %75 = tpu.reciprocal %74 {approx = true} : vector<288x8xf32> -> vector<288x8xf32>
    %76 = arith.mulf %69, %75 : vector<288x8xf32>
    %c0_54 = arith.constant 0 : index
    %c0_55 = arith.constant 0 : index
    %c0_56 = arith.constant 0 : index
    %77 = vector.load %arg5[%c0_54, %c0_55, %c0_56] : memref<1x288x8xf32, #tpu.memory_space<vmem>>, vector<1x288x8xf32>
    %78 = vector.shape_cast %77 : vector<1x288x8xf32> to vector<288x8xf32>
    %79 = vector.shape_cast %76 : vector<288x8xf32> to vector<1x288x8xf32>
    tpu.vector_store %arg5[%c0_54, %c0_55, %c0_56], %79 {strides = array<i32>} : memref<1x288x8xf32, #tpu.memory_space<vmem>>, vector<1x288x8xf32>,
    return
  }
  func.func @transform_0(%arg0: i32) -> (i32, i32, i32) {
    %c0_i32 = arith.constant 0 : i32
    %c0_i32_0 = arith.constant 0 : i32
    %c0_i32_1 = arith.constant 0 : i32
    return %arg0, %c0_i32, %c0_i32_0 : i32, i32, i32
  }
  func.func @transform_1(%arg0: i32) -> (i32, i32, i32) {
    %c0_i32 = arith.constant 0 : i32
    %c0_i32_0 = arith.constant 0 : i32
    %c0_i32_1 = arith.constant 0 : i32
    %c0_i32_2 = arith.constant 0 : i32
    return %c0_i32, %c0_i32_0, %c0_i32_1 : i32, i32, i32
  }
  func.func @transform_2(%arg0: i32) -> (i32, i32) {
    %c0_i32 = arith.constant 0 : i32
    %c0_i32_0 = arith.constant 0 : i32
    %c0_i32_1 = arith.constant 0 : i32
    return %c0_i32, %c0_i32_0 : i32, i32
  }
  func.func @transform_3(%arg0: i32) -> (i32, i32) {
    %c0_i32 = arith.constant 0 : i32
    %c0_i32_0 = arith.constant 0 : i32
    %c0_i32_1 = arith.constant 0 : i32
    return %c0_i32, %c0_i32_0 : i32, i32
  }
  func.func @transform_4(%arg0: i32) -> (i32, i32, i32) {
    %c0_i32 = arith.constant 0 : i32
    %c0_i32_0 = arith.constant 0 : i32
    %c0_i32_1 = arith.constant 0 : i32
    return %arg0, %c0_i32, %c0_i32_0 : i32, i32, i32
  }
}

</mosaic_0001>

<bundles_post_ra>
// kernel: conv_forward.1
= control target key start
LH: loop header
LB: loop body
LE: loop exit
PB: predicated region body
PF: predicated region fallthrough
CT: control target
= control target key end

     0   :  { %s4637_s15 = smov 0   ;;  %s5673_s0 = inlined_call_operand.vmem [shape: f32[2,326,4], index: 0, kind: input, shape index: {}]   ;;  %s5674_s1 = inlined_call_operand.vmem [shape: bf16[9,4,8], index: 1, kind: input, shape index: {}]   ;;  %s5675_s2 = inlined_call_operand.vmem [shape: f32[1,8], index: 2, kind: input, shape index: {}]   ;;  %s5676_s3 = inlined_call_operand.vmem [shape: f32[1,8], index: 3, kind: input, shape index: {}]   ;;  %s5677_s4 = inlined_call_operand.vmem [shape: f32[2,288,8], index: 4, kind: output, shape index: {}]  }
   0x1 LB: > { %s3456_s16 = sadd.s32 4294967295, %s4610_s15   ;;  %p3460_p0 = scmp.ge.s32.totalorder %s4610_s15, 1  ;;  %s4610_s15 = sphi %s4637_s15, %s14_s15  }
   0x2   : > { %p162_p1 = scmp.lt.s32.totalorder %s4610_s15, 3 }
   0x4   : > { %p163_p2 = pnand %p3460_p0, %p162_p1 }
   0x5   : > { %vm365_vm0 = vcmask (!%p163_p2), 1041408   ;;  %v4648_v0 = vld [vmem:[%s5674_s1 + $0x8] sm:$0x3] (!%p163_p2)  ;;  %v3463_v1 = vld [vmem:[%s5674_s1 + $0x2] sm:$0x3] (!%p163_p2)  ;;  %p188_p3 = scmp.lt.s32.totalorder (!%p163_p2), %s3456_s16, 1 }
   0x6   : > { %166 = sbr.rel (%p163_p2) target bundleno = 606 (0x25e), region = 36  ;;  %4444 = vmatprep.subr.msk.bf16.mxu0 (!%p163_p2), %vm365_vm0, %v4648_v0  ;;  %4440 = vmatprep.subr.msk.bf16.mxu1 (!%p163_p2), %vm365_vm0, %v3463_v1  ;;  %v4658_v2 = vsel (!%p163_p2), %vm365_vm0, %v4648_v0, 0  ;;  %v367_v3 = vsel (!%p163_p2), %vm365_vm0, %v3463_v1, 0  ;;  %v3557_v4 = vld [vmem:[%s5674_s1 + $0xa] sm:$0x3] (!%p163_p2)  ;;  %vm310_vm1 = vcmask (!%p163_p2), 31744  }
   0x7   : > { %3961 = vmatpush3.bf16.msra.mxu0 (!%p163_p2), %v4658_v2  ;;  %3809 = vmatpush3.bf16.msra.mxu1 (!%p163_p2), %v367_v3  ;;  %v253_v5 = vld [vmem:[%s5674_s1] sm:$0x3] (!%p163_p2)  ;;  %v1869_v20 = vsel (!%p163_p2), %vm365_vm0, %v3557_v4, 0  ;;  %v4698_v26 = vld [vmem:[%s5674_s1 + $0xc] sm:$0x3] (!%p163_p2)  ;;  %vm3364_vm2 = vcmask (!%p163_p2), 64512  }
   0x8   : > { %4446 = vmatprep.subr.msk.bf16.mxu0 (!%p163_p2), %vm365_vm0, %v3557_v4  ;;  %4441 = vmatprep.subr.msk.bf16.mxu1 (!%p163_p2), %vm365_vm0, %v253_v5  ;;  %v601_v18 = vsel (!%p163_p2), %vm365_vm0, %v253_v5, 0  ;;  %v4703_v27 = vld [vmem:[%s5674_s1 + $0x4] sm:$0x3] (!%p163_p2) }
   0xd   : > { %s5679_s16 = smov (!%p188_p3, %s3456_s16), 1 }
   0xe   : > { %s4450_s25 = smul.u32 328, %s5679_s16 }
   0xf   : > { %s4451_s19 = smul.u32 288, %s5679_s16 }
  0x10   : > { %s4676_s28 = scalar_lea.vmem %s5673_s0, %s4450_s25 }
  0x11   : > { %v254_v6 = vld [vmem:[%s4676_s28 + $0x1] sm:$0xff]  ;;  %v255_v7 = vld [vmem:[%s4676_s28 + $0x9] sm:$0xff]  ;;  %v1432_v8 = vld [vmem:[%s4676_s28 + $0x13] sm:$0xff]  ;;  %s5413_s21 = scalar_lea.vmem %s5677_s4, %s4451_s19 }
  0x12   : > { %v290_v9 = vpack.c.bf16 %v255_v7, %v254_v6  ;;  %v1433_v10 = vld [vmem:[%s4676_s28 + $0x1b] sm:$0xff]  ;;  %v256_v11 = vld [vmem:[%s4676_s28 + $0x11] sm:$0xff]  ;;  %v1434_v15 = vld [vmem:[%s4676_s28 + $0x23] sm:$0xff] }
  0x13   : > { %v257_v12 = vld [vmem:[%s4676_s28 + $0x19] sm:$0xff]  ;;  %v1468_v13 = vpack.c.bf16 %v1433_v10, %v1432_v8  ;;  %v1435_v16 = vld [vmem:[%s4676_s28 + $0x2b] sm:$0xff]  ;;  %v258_v17 = vld [vmem:[%s4676_s28 + $0x21] sm:$0xff] }
  0x14   : > { %v291_v14 = vpack.c.bf16 %v257_v12, %v256_v11  ;;  %3810 = vmatprep.mubr.msk.bf16.mxu1 %vm310_vm1, %v290_v9  ;;  %v1469_v19 = vpack.c.bf16 %v1435_v16, %v1434_v15  ;;  %v259_v21 = vld [vmem:[%s4676_s28 + $0x29] sm:$0xff]  ;;  %v1436_v22 = vld [vmem:[%s4676_s28 + $0x33] sm:$0xff]  ;;  %v1437_v23 = vld [vmem:[%s4676_s28 + $0x3b] sm:$0xff] }
  0x15   : > { %3962 = vmatprep.mubr.msk.bf16.mxu0 %vm310_vm1, %v1468_v13  ;;  %v292_v24 = vpack.c.bf16 %v259_v21, %v258_v17  ;;  %v1470_v25 = vpack.c.bf16 %v1437_v23, %v1436_v22  ;;  %v260_v28 = vld [vmem:[%s4676_s28 + $0x31] sm:$0xff]  ;;  %v261_v29 = vld [vmem:[%s4676_s28 + $0x39] sm:$0xff]  ;;  %v1438_v30 = vld [vmem:[%s4676_s28 + $0x43] sm:$0xff] }
  0x16   : > { %3811 = vmatmul.mubr.msk.bf16.vlgmr.msra.gmra.mrb[0].mxu1 %vm310_vm1, %v291_v14  ;;  %3963 = vmatmul.mubr.msk.bf16.vlgmr.msra.gmra.mrb[0].mxu0 %vm310_vm1, %v1469_v19  ;;  %v1439_v31 = vld [vmem:[%s4676_s28 + $0x4b] sm:$0xff]  ;;  %v262_v32 = vld [vmem:[%s4676_s28 + $0x41] sm:$0xff]  ;;  %v1440_v34 = vld [vmem:[%s4676_s28 + $0x53] sm:$0xff]  ;;  %v293_v36 = vpack.c.bf16 %v261_v29, %v260_v28  ;;  %v2195_v28 = vsel %vm365_vm0, %v4698_v26, 0 }
  0x17   : > { %3847 = vmatpush3.bf16.msra.mxu1 %v601_v18  ;;  %3999 = vmatpush3.bf16.msra.mxu0 %v1869_v20  ;;  %v263_v33 = vld [vmem:[%s4676_s28 + $0x49] sm:$0xff]  ;;  %v1441_v35 = vld [vmem:[%s4676_s28 + $0x5b] sm:$0xff]  ;;  %v1471_v37 = vpack.c.bf16 %v1439_v31, %v1438_v30  ;;  %v264_v40 = vld [vmem:[%s4676_s28 + $0x51] sm:$0xff] }
  0x18   : > { %3814 = vmatprep.mubr.msk.bf16.mxu1 %vm310_vm1, %v292_v24  ;;  %3966 = vmatprep.mubr.msk.bf16.mxu0 %vm310_vm1, %v1470_v25  ;;  %v294_v38 = vpack.c.bf16 %v263_v33, %v262_v32  ;;  %v1472_v39 = vpack.c.bf16 %v1441_v35, %v1440_v34  ;;  %v265_v41 = vld [vmem:[%s4676_s28 + $0x59] sm:$0xff]  ;;  %v1442_v42 = vld [vmem:[%s4676_s28 + $0x63] sm:$0xff]  ;;  %v1443_v43 = vld [vmem:[%s4676_s28 + $0x6b] sm:$0xff] }
  0x19   : > { %4447 = vmatprep.subr.msk.bf16.mxu0 %vm365_vm0, %v4698_v26  ;;  %4442 = vmatprep.subr.msk.bf16.mxu1 %vm365_vm0, %v4703_v27  ;;  %v266_v44 = vld [vmem:[%s4676_s28 + $0x61] sm:$0xff]  ;;  %v267_v45 = vld [vmem:[%s4676_s28 + $0x69] sm:$0xff]  ;;  %v1444_v46 = vld [vmem:[%s4676_s28 + $0x73] sm:$0xff]  ;;  %v295_v48 = vpack.c.bf16 %v265_v41, %v264_v40  ;;  %v1473_v49 = vpack.c.bf16 %v1443_v43, %v1442_v42 }
  0x1a   : > { %v1445_v47 = vld [vmem:[%s4676_s28 + $0x7b] sm:$0xff]  ;;  %v296_v50 = vpack.c.bf16 %v267_v45, %v266_v44  ;;  %v268_v52 = vld [vmem:[%s4676_s28 + $0x71] sm:$0xff]  ;;  %v1446_v54 = vld [vmem:[%s4676_s28 + $0x83] sm:$0xff] }
  0x1b   : > { %v1474_v51 = vpack.c.bf16 %v1445_v47, %v1444_v46  ;;  %v269_v53 = vld [vmem:[%s4676_s28 + $0x79] sm:$0xff]  ;;  %v1447_v55 = vld [vmem:[%s4676_s28 + $0x8b] sm:$0xff]  ;;  %v270_v56 = vld [vmem:[%s4676_s28 + $0x81] sm:$0xff] }
  0x1c   : > { %v271_v57 = vld [vmem:[%s4676_s28 + $0x89] sm:$0xff]  ;;  %v1448_v58 = vld [vmem:[%s4676_s28 + $0x93] sm:$0xff]  ;;  %v1449_v59 = vld [vmem:[%s4676_s28 + $0x9b] sm:$0xff]  ;;  %v297_v60 = vpack.c.bf16 %v269_v53, %v268_v52  ;;  %v1475_v61 = vpack.c.bf16 %v1447_v55, %v1446_v54 }
  0x1d   : > { %v298_v62 = vpack.c.bf16 %v271_v57, %v270_v56  ;;  %v1476_v63 = vpack.c.bf16 %v1449_v59, %v1448_v58  ;;  %v272_v1 = vld [vmem:[%s4676_s28 + $0x91] sm:$0xff]  ;;  %v273_v3 = vld [vmem:[%s4676_s28 + $0x99] sm:$0xff]  ;;  %v1450_v4 = vld [vmem:[%s4676_s28 + $0xa3] sm:$0xff] }
  0x1e   : > { %3815 = vmatmul.mubr.msk.bf16.gmra.mrb[4].mxu1 %vm310_vm1, %v293_v36  ;;  %3967 = vmatmul.mubr.msk.bf16.gmra.mrb[4].mxu0 %vm310_vm1, %v1471_v37  ;;  %v1451_v5 = vld [vmem:[%s4676_s28 + $0xab] sm:$0xff]  ;;  %v274_v6 = vld [vmem:[%s4676_s28 + $0xa1] sm:$0xff]  ;;  %v1758_v8 = vld [vmem:[%s4676_s28 + $0x14] sm:$0xff]  ;;  %v299_v10 = vpack.c.bf16 %v273_v3, %v272_v1 }
  0x1f   : > { %3818 = vmatprep.mubr.msk.bf16.mxu1 %vm310_vm1, %v294_v38  ;;  %3970 = vmatprep.mubr.msk.bf16.mxu0 %vm310_vm1, %v1472_v39  ;;  %v275_v7 = vld [vmem:[%s4676_s28 + $0xa9] sm:$0xff]  ;;  %v1759_v9 = vld [vmem:[%s4676_s28 + $0x1c] sm:$0xff]  ;;  %v1477_v11 = vpack.c.bf16 %v1451_v5, %v1450_v4  ;;  %v276_v14 = vld [vmem:[%s4676_s28 + $0xb1] sm:$0xff] }
  0x20   : > { %v300_v12 = vpack.c.bf16 %v275_v7, %v274_v6  ;;  %v1794_v13 = vpack.c.bf16 %v1759_v9, %v1758_v8  ;;  %v277_v15 = vld [vmem:[%s4676_s28 + $0xb9] sm:$0xff]  ;;  %v1760_v16 = vld [vmem:[%s4676_s28 + $0x24] sm:$0xff]  ;;  %v1761_v17 = vld [vmem:[%s4676_s28 + $0x2c] sm:$0xff] }
  0x21   : > { %v278_v18 = vld [vmem:[%s4676_s28 + $0xc1] sm:$0xff]  ;;  %v279_v19 = vld [vmem:[%s4676_s28 + $0xc9] sm:$0xff]  ;;  %v1762_v20 = vld [vmem:[%s4676_s28 + $0x34] sm:$0xff]  ;;  %v301_v22 = vpack.c.bf16 %v277_v15, %v276_v14  ;;  %v4768_v23 = vpack.c.bf16 %v1761_v17, %v1760_v16  ;;  %v891_v15 = vsel %vm365_vm0, %v4703_v27, 0 }
  0x22   : > { %v1763_v21 = vld [vmem:[%s4676_s28 + $0x3c] sm:$0xff]  ;;  %v302_v24 = vpack.c.bf16 %v279_v19, %v278_v18  ;;  %v4778_v29 = vld [vmem:[%s5674_s1 + $0xe] sm:$0x3]  ;;  %v280_v30 = vld [vmem:[%s4676_s28 + $0xd1] sm:$0xff] }
  0x23   : > { %v4770_v25 = vpack.c.bf16 %v1763_v21, %v1762_v20  ;;  %v281_v31 = vld [vmem:[%s4676_s28 + $0xd9] sm:$0xff]  ;;  %v1764_v32 = vld [vmem:[%s4676_s28 + $0x44] sm:$0xff]  ;;  %v1765_v26 = vld [vmem:[%s4676_s28 + $0x4c] sm:$0xff] }
  0x24   : > { %v282_v33 = vld [vmem:[%s4676_s28 + $0xe1] sm:$0xff]  ;;  %v283_v34 = vld [vmem:[%s4676_s28 + $0xe9] sm:$0xff]  ;;  %v1766_v35 = vld [vmem:[%s4676_s28 + $0x54] sm:$0xff]  ;;  %v303_v37 = vpack.c.bf16 %v281_v31, %v280_v30  ;;  %v4795_v38 = vpack.c.bf16 %v1765_v26, %v1764_v32 }
  0x25   : > { %v1767_v36 = vld [vmem:[%s4676_s28 + $0x5c] sm:$0xff]  ;;  %v304_v39 = vpack.c.bf16 %v283_v34, %v282_v33  ;;  %v284_v41 = vld [vmem:[%s4676_s28 + $0xf1] sm:$0xff]  ;;  %v1768_v43 = vld [vmem:[%s4676_s28 + $0x64] sm:$0xff] }
  0x26   : > { %3819 = vmatmul.mubr.msk.bf16.gmra.mrb[8].mxu1 %vm310_vm1, %v295_v48  ;;  %3971 = vmatmul.mubr.msk.bf16.gmra.mrb[8].mxu0 %vm310_vm1, %v1473_v49  ;;  %v4797_v40 = vpack.c.bf16 %v1767_v36, %v1766_v35  ;;  %v285_v42 = vld [vmem:[%s4676_s28 + $0xf9] sm:$0xff]  ;;  %v1769_v44 = vld [vmem:[%s4676_s28 + $0x6c] sm:$0xff]  ;;  %v286_v45 = vld [vmem:[%s4676_s28 + $0x101] sm:$0xff] }
  0x27   : > { %3822 = vmatprep.mubr.msk.bf16.mxu1 %vm310_vm1, %v296_v50  ;;  %3974 = vmatprep.mubr.msk.bf16.mxu0 %vm310_vm1, %v1474_v51  ;;  %v287_v46 = vld [vmem:[%s4676_s28 + $0x109] sm:$0xff]  ;;  %v1770_v47 = vld [vmem:[%s4676_s28 + $0x74] sm:$0xff]  ;;  %v1771_v48 = vld [vmem:[%s4676_s28 + $0x7c] sm:$0xff]  ;;  %v305_v49 = vpack.c.bf16 %v285_v42, %v284_v41  ;;  %v4813_v50 = vpack.c.bf16 %v1769_v44, %v1768_v43 }
  0x28   : > { %v306_v51 = vpack.c.bf16 %v287_v46, %v286_v45  ;;  %v4815_v52 = vpack.c.bf16 %v1771_v48, %v1770_v47  ;;  %v288_v53 = vld [vmem:[%s4676_s28 + $0x111] sm:$0xff]  ;;  %v289_v54 = vld [vmem:[%s4676_s28 + $0x119] sm:$0xff]  ;;  %v1772_v55 = vld [vmem:[%s4676_s28 + $0x84] sm:$0xff] }
  0x29   : > { %v1773_v56 = vld [vmem:[%s4676_s28 + $0x8c] sm:$0xff]  ;;  %v199_v57 = vld [vmem:[%s4676_s28] sm:$0xff]  ;;  %v1774_v59 = vld [vmem:[%s4676_s28 + $0x94] sm:$0xff] }
  0x2a   : > { %v200_v58 = vld [vmem:[%s4676_s28 + $0x8] sm:$0xff]  ;;  %v201_v3 = vld [vmem:[%s4676_s28 + $0x10] sm:$0xff]  ;;  %v202_v4 = vld [vmem:[%s4676_s28 + $0x18] sm:$0xff] }
  0x2b   : > { %v1776_v5 = vld [vmem:[%s4676_s28 + $0xa4] sm:$0xff]  ;;  %v1777_v6 = vld [vmem:[%s4676_s28 + $0xac] sm:$0xff]  ;;  %v1778_v9 = vld [vmem:[%s4676_s28 + $0xb4] sm:$0xff] }
  0x2c   : > { %v203_v7 = vld [vmem:[%s4676_s28 + $0x20] sm:$0xff]  ;;  %v204_v8 = vld [vmem:[%s4676_s28 + $0x28] sm:$0xff]  ;;  %v205_v17 = vld [vmem:[%s4676_s28 + $0x30] sm:$0xff] }
  0x2d   : > { %v4859_v16 = vld [vmem:[%s5674_s1 + $0x6] sm:$0x3]  ;;  %v206_v18 = vld [vmem:[%s4676_s28 + $0x38] sm:$0xff]  ;;  %v1781_v27 = vld [vmem:[%s4676_s28 + $0xcc] sm:$0xff] }
  0x2e   : > { %3823 = vmatmul.mubr.msk.bf16.gmra.mrb[12].mxu1 %vm310_vm1, %v297_v60  ;;  %3975 = vmatmul.mubr.msk.bf16.gmra.mrb[12].mxu0 %vm310_vm1, %v1475_v61  ;;  %v1775_v60 = vld [vmem:[%s4676_s28 + $0x9c] sm:$0xff]  ;;  %v307_v61 = vpack.c.bf16 %v289_v54, %v288_v53  ;;  %v1780_v19 = vld [vmem:[%s4676_s28 + $0xc4] sm:$0xff]  ;;  %v209_v26 = vld [vmem:[%s4676_s28 + $0x50] sm:$0xff] }
  0x2f   : > { %3826 = vmatprep.mubr.msk.bf16.mxu1 %vm310_vm1, %v298_v62  ;;  %3978 = vmatprep.mubr.msk.bf16.mxu0 %vm310_vm1, %v1476_v63  ;;  %v4831_v62 = vpack.c.bf16 %v1773_v56, %v1772_v55  ;;  %v235_v63 = vpack.c.bf16 %v200_v58, %v199_v57  ;;  %v4833_v1 = vpack.c.bf16 %v1775_v60, %v1774_v59  ;;  %v207_v20 = vld [vmem:[%s4676_s28 + $0x40] sm:$0xff]  ;;  %v208_v21 = vld [vmem:[%s4676_s28 + $0x48] sm:$0xff]  ;;  %v210_v33 = vld [vmem:[%s4676_s28 + $0x58] sm:$0xff] }
  0x30   : > { %v4876_v30 = vpack.c.bf16 %v1781_v27, %v1780_v19  ;;  %v239_v31 = vpack.c.bf16 %v208_v21, %v207_v20  ;;  %v1784_v34 = vld [vmem:[%s4676_s28 + $0xe4] sm:$0xff]  ;;  %v1785_v35 = vld [vmem:[%s4676_s28 + $0xec] sm:$0xff]  ;;  %v1787_v41 = vld [vmem:[%s4676_s28 + $0xfc] sm:$0xff]  ;;  %v240_v42 = vpack.c.bf16 %v210_v33, %v209_v26 }
  0x31   : > { %v211_v36 = vld [vmem:[%s4676_s28 + $0x60] sm:$0xff]  ;;  %v4894_v43 = vpack.c.bf16 %v1785_v35, %v1784_v34  ;;  %v213_v46 = vld [vmem:[%s4676_s28 + $0x70] sm:$0xff]  ;;  %v214_v47 = vld [vmem:[%s4676_s28 + $0x78] sm:$0xff] }
  0x32   : > { %v1788_v48 = vld [vmem:[%s4676_s28 + $0x104] sm:$0xff]  ;;  %v1790_v54 = vld [vmem:[%s4676_s28 + $0x114] sm:$0xff]  ;;  %v1791_v55 = vld [vmem:[%s4676_s28 + $0x11c] sm:$0xff]  ;;  %v242_v56 = vpack.c.bf16 %v214_v47, %v213_v46 }
  0x33   : > { %v216_v53 = vld [vmem:[%s4676_s28 + $0x88] sm:$0xff]  ;;  %v4914_v59 = vpack.c.bf16 %v1791_v55, %v1790_v54  ;;  %v217_v60 = vld [vmem:[%s4676_s28 + $0x90] sm:$0xff]  ;;  %v226_v27 = vld [vmem:[%s4676_s28 + $0xd8] sm:$0xff] }
  0x34   : > { %v4946_v19 = vld [vmem:[%s5674_s1 + $0x10] sm:$0x3]  ;;  %v228_v20 = vld [vmem:[%s4676_s28 + $0xe8] sm:$0xff]  ;;  %v234_v33 = vld [vmem:[%s4676_s28 + $0x118] sm:$0xff] }
  0x35   : > { %v781_v34 = vld [vmem:[%s4676_s28 + $0xa] sm:$0xff]  ;;  %v796_v54 = vld [vmem:[%s4676_s28 + $0x82] sm:$0xff] }
  0x36   : > { %3827 = vmatmul.mubr.msk.bf16.gmra.mrb[16].mxu1 %vm310_vm1, %v299_v10  ;;  %3979 = vmatmul.mubr.msk.bf16.gmra.mrb[16].mxu0 %vm310_vm1, %v1477_v11  ;;  %v1779_v10 = vld [vmem:[%s4676_s28 + $0xbc] sm:$0xff]  ;;  %v236_v11 = vpack.c.bf16 %v202_v4, %v201_v3  ;;  %v1793_v3 = vld [vmem:[%s4676_s28 + $0x12c] sm:$0xff] }
  0x37   : > { %3830 = vmatprep.mubr.msk.bf16.mxu1 %vm310_vm1, %v300_v12  ;;  %4000 = vmatprep.mubr.msk.bf16.mxu0 %vm310_vm1, %v1794_v13  ;;  %v4849_v12 = vpack.c.bf16 %v1777_v6, %v1776_v5  ;;  %v237_v13 = vpack.c.bf16 %v204_v8, %v203_v7  ;;  %v4851_v14 = vpack.c.bf16 %v1779_v10, %v1778_v9  ;;  %v219_v4 = vld [vmem:[%s4676_s28 + $0xa0] sm:$0xff]  ;;  %v220_v5 = vld [vmem:[%s4676_s28 + $0xa8] sm:$0xff]  ;;  %v221_v9 = vld [vmem:[%s4676_s28 + $0xb0] sm:$0xff] }
  0x38   : > { %v245_v8 = vpack.c.bf16 %v220_v5, %v219_v4  ;;  %v222_v10 = vld [vmem:[%s4676_s28 + $0xb8] sm:$0xff]  ;;  %v789_v46 = vld [vmem:[%s4676_s28 + $0x4a] sm:$0xff] }
  0x39   : > { %v797_v55 = vld [vmem:[%s4676_s28 + $0x8a] sm:$0xff] }
  0x3a   : > { %v2410_v4 = vld [vmem:[%s4676_s28 + $0x25] sm:$0xff] }
  0x3e   : > { %3831 = vmatmul.mubr.msk.bf16.gmra.mrb[20].mxu1 %vm310_vm1, %v301_v22  ;;  %4001 = vmatmul.mubr.msk.bf16.vlgmr.msra.gmra.mrb[0].mxu0 %vm310_vm1, %v4768_v23  ;;  %v1782_v22 = vld [vmem:[%s4676_s28 + $0xd4] sm:$0xff] }
  0x3f   : > { %3834 = vmatprep.mubr.msk.bf16.mxu1 %vm310_vm1, %v302_v24  ;;  %4037 = vmatpush3.bf16.msra.mxu0 %v2195_v28  ;;  %v1783_v24 = vld [vmem:[%s4676_s28 + $0xdc] sm:$0xff]  ;;  %v238_v28 = vpack.c.bf16 %v206_v18, %v205_v17  ;;  %v2521_v18 = vsel %vm365_vm0, %v4778_v29, 0 }
  0x40   : > { %4004 = vmatprep.mubr.msk.bf16.mxu0 %vm310_vm1, %v4770_v25  ;;  %4448 = vmatprep.subr.msk.bf16.mxu0 %vm365_vm0, %v4778_v29  ;;  %v4878_v32 = vpack.c.bf16 %v1783_v24, %v1782_v22  ;;  %v227_v29 = vld [vmem:[%s4676_s28 + $0xe0] sm:$0xff] }
  0x41   : > { %v249_v22 = vpack.c.bf16 %v228_v20, %v227_v29  ;;  %v231_v24 = vld [vmem:[%s4676_s28 + $0x100] sm:$0xff] }
  0x46   : > { %3835 = vmatmul.mubr.msk.bf16.gmra.mrb[24].mxu1 %vm310_vm1, %v303_v37  ;;  %4005 = vmatmul.mubr.msk.bf16.gmra.mrb[4].mxu0 %vm310_vm1, %v4795_v38  ;;  %v212_v37 = vld [vmem:[%s4676_s28 + $0x68] sm:$0xff] }
  0x47   : > { %3838 = vmatprep.mubr.msk.bf16.mxu1 %vm310_vm1, %v304_v39  ;;  %4008 = vmatprep.mubr.msk.bf16.mxu0 %vm310_vm1, %v4797_v40  ;;  %v1786_v39 = vld [vmem:[%s4676_s28 + $0xf4] sm:$0xff]  ;;  %v241_v44 = vpack.c.bf16 %v212_v37, %v211_v36 }
  0x48   : > { %v4896_v45 = vpack.c.bf16 %v1787_v41, %v1786_v39  ;;  %v783_v37 = vld [vmem:[%s4676_s28 + $0x1a] sm:$0xff]  ;;  %v785_v39 = vld [vmem:[%s4676_s28 + $0x2a] sm:$0xff] }
  0x4e   : > { %3839 = vmatmul.mubr.msk.bf16.gmra.mrb[28].mxu1 %vm310_vm1, %v305_v49  ;;  %4009 = vmatmul.mubr.msk.bf16.gmra.mrb[8].mxu0 %vm310_vm1, %v4813_v50  ;;  %v1789_v49 = vld [vmem:[%s4676_s28 + $0x10c] sm:$0xff] }
  0x4f   : > { %3842 = vmatprep.mubr.msk.bf16.mxu1 %vm310_vm1, %v306_v51  ;;  %4012 = vmatprep.mubr.msk.bf16.mxu0 %vm310_vm1, %v4815_v52  ;;  %v215_v51 = vld [vmem:[%s4676_s28 + $0x80] sm:$0xff]  ;;  %v4912_v57 = vpack.c.bf16 %v1789_v49, %v1788_v48  ;;  %v793_v49 = vld [vmem:[%s4676_s28 + $0x6a] sm:$0xff] }
  0x50   : > { %v243_v58 = vpack.c.bf16 %v216_v53, %v215_v51  ;;  %v791_v48 = vld [vmem:[%s4676_s28 + $0x5a] sm:$0xff] }
  0x56   : > { %3843 = vmatmul.mubr.msk.bf16.gmra.mrb[32].mxu1 %vm310_vm1, %v307_v61  ;;  %4013 = vmatmul.mubr.msk.bf16.gmra.mrb[12].mxu0 %vm310_vm1, %v4831_v62  ;;  %v218_v61 = vld [vmem:[%s4676_s28 + $0x98] sm:$0xff] }
  0x57   : > { %3848 = vmatprep.mubr.msk.bf16.mxu1 %vm310_vm1, %v235_v63  ;;  %4016 = vmatprep.mubr.msk.bf16.mxu0 %vm310_vm1, %v4833_v1  ;;  %v1792_v63 = vld [vmem:[%s4676_s28 + $0x124] sm:$0xff]  ;;  %v244_v6 = vpack.c.bf16 %v218_v61, %v217_v60  ;;  %v799_v60 = vld [vmem:[%s4676_s28 + $0x9a] sm:$0xff] }
  0x58   : > { %v4928_v7 = vpack.c.bf16 %v1793_v3, %v1792_v63  ;;  %v2119_v61 = vld [vmem:[%s4676_s28 + $0x13c] sm:$0xff]  ;;  %v801_v3 = vld [vmem:[%s4676_s28 + $0xaa] sm:$0xff] }
  0x59   : > { %v800_v63 = vld [vmem:[%s4676_s28 + $0xa2] sm:$0xff] }
  0x5e   : > { %3849 = vmatmul.mubr.msk.bf16.vlgmr.msra.gmra.mrb[0].mxu1 %vm310_vm1, %v236_v11  ;;  %4017 = vmatmul.mubr.msk.bf16.gmra.mrb[16].mxu0 %vm310_vm1, %v4849_v12  ;;  %v223_v11 = vld [vmem:[%s4676_s28 + $0xc0] sm:$0xff] }
  0x5f   : > { %3852 = vmatprep.mubr.msk.bf16.mxu1 %vm310_vm1, %v237_v13  ;;  %4020 = vmatprep.mubr.msk.bf16.mxu0 %vm310_vm1, %v4851_v14  ;;  %v224_v13 = vld [vmem:[%s4676_s28 + $0xc8] sm:$0xff] }
  0x60   : > { %3885 = vmatpush3.bf16.msra.mxu1 %v891_v15  ;;  %v246_v15 = vpack.c.bf16 %v222_v10, %v221_v9  ;;  %v247_v17 = vpack.c.bf16 %v224_v13, %v223_v11  ;;  %v803_v10 = vld [vmem:[%s4676_s28 + $0xba] sm:$0xff] }
  0x61   : > { %4443 = vmatprep.subr.msk.bf16.mxu1 %vm365_vm0, %v4859_v16  ;;  %v2412_v11 = vld [vmem:[%s4676_s28 + $0x35] sm:$0xff]  ;;  %v2413_v13 = vld [vmem:[%s4676_s28 + $0x3d] sm:$0xff] }
  0x62   : > { %v2447_v29 = vpack.c.bf16 %v2413_v13, %v2412_v11 }
  0x66   : > { %3853 = vmatmul.mubr.msk.bf16.gmra.mrb[4].mxu1 %vm310_vm1, %v238_v28  ;;  %4021 = vmatmul.mubr.msk.bf16.gmra.mrb[20].mxu0 %vm310_vm1, %v4876_v30  ;;  %v232_v28 = vld [vmem:[%s4676_s28 + $0x108] sm:$0xff] }
  0x67   : > { %3856 = vmatprep.mubr.msk.bf16.mxu1 %vm310_vm1, %v239_v31  ;;  %4024 = vmatprep.mubr.msk.bf16.mxu0 %vm310_vm1, %v4878_v32  ;;  %v251_v26 = vpack.c.bf16 %v232_v28, %v231_v24  ;;  %v2416_v24 = vld [vmem:[%s4676_s28 + $0x55] sm:$0xff]  ;;  %v2417_v28 = vld [vmem:[%s4676_s28 + $0x5d] sm:$0xff] }
  0x6e   : > { %3857 = vmatmul.mubr.msk.bf16.gmra.mrb[8].mxu1 %vm310_vm1, %v240_v42  ;;  %4025 = vmatmul.mubr.msk.bf16.gmra.mrb[24].mxu0 %vm310_vm1, %v4894_v43 }
  0x6f   : > { %3860 = vmatprep.mubr.msk.bf16.mxu1 %vm310_vm1, %v241_v44  ;;  %4028 = vmatprep.mubr.msk.bf16.mxu0 %vm310_vm1, %v4896_v45  ;;  %v1217_v44 = vsel %vm365_vm0, %v4859_v16, 0  ;;  %v788_v16 = vld [vmem:[%s4676_s28 + $0x42] sm:$0xff] }
  0x76   : > { %3861 = vmatmul.mubr.msk.bf16.gmra.mrb[12].mxu1 %vm310_vm1, %v242_v56  ;;  %4029 = vmatmul.mubr.msk.bf16.gmra.mrb[28].mxu0 %vm310_vm1, %v4912_v57 }
  0x77   : > { %3864 = vmatprep.mubr.msk.bf16.mxu1 %vm310_vm1, %v243_v58  ;;  %4032 = vmatprep.mubr.msk.bf16.mxu0 %vm310_vm1, %v4914_v59  ;;  %v5043_v58 = vpack.c.bf16 %v797_v55, %v796_v54  ;;  %v2426_v54 = vld [vmem:[%s4676_s28 + $0xa5] sm:$0xff]  ;;  %v2427_v55 = vld [vmem:[%s4676_s28 + $0xad] sm:$0xff] }
  0x7e   : > { %3865 = vmatmul.mubr.msk.bf16.gmra.mrb[16].mxu1 %vm310_vm1, %v244_v6  ;;  %4033 = vmatmul.mubr.msk.bf16.gmra.mrb[32].mxu0 %vm310_vm1, %v4928_v7 }
  0x7f   : > { %3868 = vmatprep.mubr.msk.bf16.mxu1 %vm310_vm1, %v245_v8  ;;  %4038 = vmatprep.mubr.msk.bf16.mxu0 %vm310_vm1, %v4768_v23  ;;  %v225_v23 = vld [vmem:[%s4676_s28 + $0xd0] sm:$0xff]  ;;  %v5063_v8 = vpack.c.bf16 %v801_v3, %v800_v63  ;;  %v2429_v63 = vld [vmem:[%s4676_s28 + $0xbd] sm:$0xff]  ;;  %v2430_v3 = vld [vmem:[%s4676_s28 + $0xc5] sm:$0xff] }
  0x80   : > { %v248_v21 = vpack.c.bf16 %v226_v27, %v225_v23  ;;  %v2415_v23 = vld [vmem:[%s4676_s28 + $0x4d] sm:$0xff] }
  0x86   : > { %3869 = vmatmul.mubr.msk.bf16.gmra.mrb[20].mxu1 %vm310_vm1, %v246_v15  ;;  %4039 = vmatmul.mubr.msk.bf16.vlgmr.msra.gmra.mrb[0].mxu0 %vm310_vm1, %v4770_v25  ;;  %v229_v25 = vld [vmem:[%s4676_s28 + $0xf0] sm:$0xff]  ;;  %v804_v15 = vld [vmem:[%s4676_s28 + $0xc2] sm:$0xff] }
  0x87   : > { %3872 = vmatprep.mubr.msk.bf16.mxu1 %vm310_vm1, %v247_v17  ;;  %4075 = vmatpush3.bf16.msra.mxu0 %v2521_v18  ;;  %v805_v17 = vld [vmem:[%s4676_s28 + $0xca] sm:$0xff] }
  0x88   : > { %4042 = vmatprep.mubr.msk.bf16.mxu0 %vm310_vm1, %v4795_v38  ;;  %4449 = vmatprep.subr.msk.bf16.mxu0 %vm365_vm0, %v4946_v19  ;;  %v230_v38 = vld [vmem:[%s4676_s28 + $0xf8] sm:$0xff]  ;;  %v2414_v18 = vld [vmem:[%s4676_s28 + $0x45] sm:$0xff]  ;;  %v5081_v20 = vpack.c.bf16 %v805_v17, %v804_v15  ;;  %v2439_v15 = vld [vmem:[%s4676_s28 + $0x10d] sm:$0xff] }
  0x89   : > { %v250_v31 = vpack.c.bf16 %v230_v38, %v229_v25  ;;  %v806_v25 = vld [vmem:[%s4676_s28 + $0xd2] sm:$0xff]  ;;  %v807_v38 = vld [vmem:[%s4676_s28 + $0xda] sm:$0xff] }
  0x8e   : > { %3873 = vmatmul.mubr.msk.bf16.gmra.mrb[24].mxu1 %vm310_vm1, %v248_v21  ;;  %4043 = vmatmul.mubr.msk.bf16.gmra.mrb[4].mxu0 %vm310_vm1, %v4797_v40  ;;  %v233_v40 = vld [vmem:[%s4676_s28 + $0x110] sm:$0xff]  ;;  %v2448_v21 = vpack.c.bf16 %v2415_v23, %v2414_v18  ;;  %v2442_v23 = vld [vmem:[%s4676_s28 + $0x125] sm:$0xff] }
  0x8f   : > { %3876 = vmatprep.mubr.msk.bf16.mxu1 %vm310_vm1, %v249_v22  ;;  %4046 = vmatprep.mubr.msk.bf16.mxu0 %vm310_vm1, %v4813_v50  ;;  %v780_v50 = vld [vmem:[%s4676_s28 + $0x2] sm:$0xff]  ;;  %v252_v35 = vpack.c.bf16 %v234_v33, %v233_v40  ;;  %v2847_v22 = vsel %vm365_vm0, %v4946_v19, 0  ;;  %v2419_v40 = vld [vmem:[%s4676_s28 + $0x6d] sm:$0xff]  ;;  %v5099_v33 = vpack.c.bf16 %v807_v38, %v806_v25 }
  0x90   : > { %v816_v36 = vpack.c.bf16 %v781_v34, %v780_v50  ;;  %v808_v19 = vld [vmem:[%s4676_s28 + $0xe2] sm:$0xff]  ;;  %v2449_v50 = vpack.c.bf16 %v2417_v28, %v2416_v24  ;;  %v2737_v38 = vld [vmem:[%s4676_s28 + $0x2e] sm:$0xff] }
  0x91   : > { %v2736_v25 = vld [vmem:[%s4676_s28 + $0x26] sm:$0xff] }
  0x92   : > { %v2772_v28 = vpack.c.bf16 %v2737_v38, %v2736_v25  ;;  %v2764_v25 = vld [vmem:[%s4676_s28 + $0x106] sm:$0xff]  ;;  %v2765_v38 = vld [vmem:[%s4676_s28 + $0x10e] sm:$0xff] }
  0x96   : > { %3877 = vmatmul.mubr.msk.bf16.gmra.mrb[28].mxu1 %vm310_vm1, %v250_v31  ;;  %4047 = vmatmul.mubr.msk.bf16.gmra.mrb[8].mxu0 %vm310_vm1, %v4815_v52  ;;  %v782_v52 = vld [vmem:[%s4676_s28 + $0x12] sm:$0xff]  ;;  %v809_v31 = vld [vmem:[%s4676_s28 + $0xea] sm:$0xff] }
  0x97   : > { %3880 = vmatprep.mubr.msk.bf16.mxu1 %vm310_vm1, %v251_v26  ;;  %4050 = vmatprep.mubr.msk.bf16.mxu0 %vm310_vm1, %v4831_v62  ;;  %v784_v62 = vld [vmem:[%s4676_s28 + $0x22] sm:$0xff]  ;;  %v4989_v41 = vpack.c.bf16 %v783_v37, %v782_v52  ;;  %v5101_v34 = vpack.c.bf16 %v809_v31, %v808_v19  ;;  %v811_v52 = vld [vmem:[%s4676_s28 + $0xfa] sm:$0xff]  ;;  %v2741_v31 = vld [vmem:[%s4676_s28 + $0x4e] sm:$0xff] }
  0x98   : > { %v4991_v42 = vpack.c.bf16 %v785_v39, %v784_v62  ;;  %v2418_v26 = vld [vmem:[%s4676_s28 + $0x65] sm:$0xff]  ;;  %v2420_v37 = vld [vmem:[%s4676_s28 + $0x75] sm:$0xff]  ;;  %v2421_v62 = vld [vmem:[%s4676_s28 + $0x7d] sm:$0xff] }
  0x99   : > { %v812_v39 = vld [vmem:[%s4676_s28 + $0x102] sm:$0xff] }
  0x9a   : > { %v2740_v19 = vld [vmem:[%s4676_s28 + $0x46] sm:$0xff] }
  0x9e   : > { %3881 = vmatmul.mubr.msk.bf16.gmra.mrb[32].mxu1 %vm310_vm1, %v252_v35  ;;  %4051 = vmatmul.mubr.msk.bf16.gmra.mrb[12].mxu0 %vm310_vm1, %v4833_v1  ;;  %v786_v1 = vld [vmem:[%s4676_s28 + $0x32] sm:$0xff]  ;;  %v2450_v35 = vpack.c.bf16 %v2419_v40, %v2418_v26  ;;  %v2774_v40 = vpack.c.bf16 %v2741_v31, %v2740_v19  ;;  %v1466_v19 = vld [vmem:[%s4676_s28 + $0x123] sm:$0xff] }
  0x9f   : > { %3886 = vmatprep.mubr.msk.bf16.mxu1 %vm310_vm1, %v816_v36  ;;  %4054 = vmatprep.mubr.msk.bf16.mxu0 %vm310_vm1, %v4849_v12  ;;  %v787_v12 = vld [vmem:[%s4676_s28 + $0x3a] sm:$0xff]  ;;  %v810_v36 = vld [vmem:[%s4676_s28 + $0xf2] sm:$0xff] }
  0xa0   : > { %v5009_v47 = vpack.c.bf16 %v787_v12, %v786_v1  ;;  %v2422_v1 = vld [vmem:[%s4676_s28 + $0x85] sm:$0xff]  ;;  %v2423_v12 = vld [vmem:[%s4676_s28 + $0x8d] sm:$0xff] }
  0xa1   : > { %v1467_v31 = vld [vmem:[%s4676_s28 + $0x12b] sm:$0xff] }
  0xa6   : > { %3887 = vmatmul.mubr.msk.bf16.vlgmr.msra.gmra.mrb[0].mxu1 %vm310_vm1, %v4989_v41  ;;  %4055 = vmatmul.mubr.msk.bf16.gmra.mrb[16].mxu0 %vm310_vm1, %v4851_v14  ;;  %v5011_v14 = vpack.c.bf16 %v789_v46, %v788_v16  ;;  %v5117_v16 = vpack.c.bf16 %v811_v52, %v810_v36  ;;  %v2451_v46 = vpack.c.bf16 %v2421_v62, %v2420_v37  ;;  %v2748_v37 = vld [vmem:[%s4676_s28 + $0x86] sm:$0xff]  ;;  %v2749_v62 = vld [vmem:[%s4676_s28 + $0x8e] sm:$0xff] }
  0xa7   : > { %3890 = vmatprep.mubr.msk.bf16.mxu1 %vm310_vm1, %v4991_v42  ;;  %4058 = vmatprep.mubr.msk.bf16.mxu0 %vm310_vm1, %v4876_v30  ;;  %v790_v30 = vld [vmem:[%s4676_s28 + $0x52] sm:$0xff] }
  0xa8   : > { %3923 = vmatpush3.bf16.msra.mxu1 %v1217_v44  ;;  %v5025_v51 = vpack.c.bf16 %v791_v48, %v790_v30  ;;  %v813_v44 = vld [vmem:[%s4676_s28 + $0x10a] sm:$0xff]  ;;  %v2452_v48 = vpack.c.bf16 %v2423_v12, %v2422_v1  ;;  %v2750_v12 = vld [vmem:[%s4676_s28 + $0x96] sm:$0xff] }
  0xa9   : > { %4445 = vmatprep.subr.msk.bf16.mxu1 %vm365_vm0, %v4648_v0  ;;  %v792_v0 = vld [vmem:[%s4676_s28 + $0x62] sm:$0xff]  ;;  %v5119_v30 = vpack.c.bf16 %v813_v44, %v812_v39  ;;  %v2778_v44 = vpack.c.bf16 %v2749_v62, %v2748_v37  ;;  %v1141_v1 = vld [vmem:[%s4676_s28 + $0x12a] sm:$0xff] }
  0xaa   : > { %v5027_v53 = vpack.c.bf16 %v793_v49, %v792_v0  ;;  %v814_v0 = vld [vmem:[%s4676_s28 + $0x112] sm:$0xff]  ;;  %v815_v49 = vld [vmem:[%s4676_s28 + $0x11a] sm:$0xff] }
  0xae   : > { %3891 = vmatmul.mubr.msk.bf16.gmra.mrb[4].mxu1 %vm310_vm1, %v5009_v47  ;;  %4059 = vmatmul.mubr.msk.bf16.gmra.mrb[20].mxu0 %vm310_vm1, %v4878_v32  ;;  %v794_v32 = vld [vmem:[%s4676_s28 + $0x72] sm:$0xff] }
  0xaf   : > { %3894 = vmatprep.mubr.msk.bf16.mxu1 %vm310_vm1, %v5011_v14  ;;  %4062 = vmatprep.mubr.msk.bf16.mxu0 %vm310_vm1, %v4894_v43  ;;  %v795_v43 = vld [vmem:[%s4676_s28 + $0x7a] sm:$0xff] }
  0xb0   : > { %v5041_v56 = vpack.c.bf16 %v795_v43, %v794_v32  ;;  %v2424_v32 = vld [vmem:[%s4676_s28 + $0x95] sm:$0xff]  ;;  %v2425_v43 = vld [vmem:[%s4676_s28 + $0x9d] sm:$0xff] }
  0xb6   : > { %3895 = vmatmul.mubr.msk.bf16.gmra.mrb[8].mxu1 %vm310_vm1, %v5025_v51  ;;  %4063 = vmatmul.mubr.msk.bf16.gmra.mrb[24].mxu0 %vm310_vm1, %v4896_v45  ;;  %v798_v45 = vld [vmem:[%s4676_s28 + $0x92] sm:$0xff] }
  0xb7   : > { %3898 = vmatprep.mubr.msk.bf16.mxu1 %vm310_vm1, %v5027_v53  ;;  %4066 = vmatprep.mubr.msk.bf16.mxu0 %vm310_vm1, %v4912_v57  ;;  %v2118_v57 = vld [vmem:[%s4676_s28 + $0x134] sm:$0xff]  ;;  %v5061_v5 = vpack.c.bf16 %v799_v60, %v798_v45  ;;  %v5133_v45 = vpack.c.bf16 %v815_v49, %v814_v0  ;;  %v2453_v60 = vpack.c.bf16 %v2425_v43, %v2424_v32 }
  0xb8   : > { %v2137_v6 = vpack.c.bf16 %v2119_v61, %v2118_v57  ;;  %v2454_v57 = vpack.c.bf16 %v2427_v55, %v2426_v54  ;;  %v2428_v61 = vld [vmem:[%s4676_s28 + $0xb5] sm:$0xff]  ;;  %v1454_v55 = vld [vmem:[%s4676_s28 + $0xc3] sm:$0xff] }
  0xb9   : > { %v2753_v0 = vld [vmem:[%s4676_s28 + $0xae] sm:$0xff] }
  0xbe   : > { %3899 = vmatmul.mubr.msk.bf16.gmra.mrb[12].mxu1 %vm310_vm1, %v5041_v56  ;;  %4067 = vmatmul.mubr.msk.bf16.gmra.mrb[28].mxu0 %vm310_vm1, %v4914_v59  ;;  %v2411_v59 = vld [vmem:[%s4676_s28 + $0x2d] sm:$0xff] }
  0xbf   : > { %3902 = vmatprep.mubr.msk.bf16.mxu1 %vm310_vm1, %v5043_v58  ;;  %4070 = vmatprep.mubr.msk.bf16.mxu0 %vm310_vm1, %v4928_v7  ;;  %v2446_v9 = vpack.c.bf16 %v2411_v59, %v2410_v4  ;;  %v802_v7 = vld [vmem:[%s4676_s28 + $0xb2] sm:$0xff]  ;;  %v2455_v59 = vpack.c.bf16 %v2429_v63, %v2428_v61  ;;  %v1457_v63 = vld [vmem:[%s4676_s28 + $0xdb] sm:$0xff] }
  0xc0   : > { %v5079_v27 = vpack.c.bf16 %v803_v10, %v802_v7  ;;  %v2431_v4 = vld [vmem:[%s4676_s28 + $0xcd] sm:$0xff]  ;;  %v2434_v7 = vld [vmem:[%s4676_s28 + $0xe5] sm:$0xff] }
  0xc1   : > { %v2435_v10 = vld [vmem:[%s4676_s28 + $0xed] sm:$0xff] }
  0xc2   : > { %v2458_v13 = vpack.c.bf16 %v2435_v10, %v2434_v7  ;;  %v1456_v61 = vld [vmem:[%s4676_s28 + $0xd3] sm:$0xff]  ;;  %v1458_v7 = vld [vmem:[%s4676_s28 + $0xe3] sm:$0xff]  ;;  %v1459_v10 = vld [vmem:[%s4676_s28 + $0xeb] sm:$0xff] }
  0xc6   : > { %3903 = vmatmul.mubr.msk.bf16.gmra.mrb[16].mxu1 %vm310_vm1, %v5061_v5  ;;  %4071 = vmatmul.mubr.msk.bf16.gmra.mrb[32].mxu0 %vm310_vm1, %v2137_v6  ;;  %v2456_v6 = vpack.c.bf16 %v2431_v4, %v2430_v3  ;;  %v2756_v3 = vld [vmem:[%s4676_s28 + $0xc6] sm:$0xff]  ;;  %v2757_v4 = vld [vmem:[%s4676_s28 + $0xce] sm:$0xff] }
  0xc7   : > { %3906 = vmatprep.mubr.msk.bf16.mxu1 %vm310_vm1, %v5063_v8  ;;  %4076 = vmatprep.mubr.msk.bf16.mxu0 %vm310_vm1, %v2446_v9  ;;  %v2433_v9 = vld [vmem:[%s4676_s28 + $0xdd] sm:$0xff] }
  0xce   : > { %3907 = vmatmul.mubr.msk.bf16.gmra.mrb[20].mxu1 %vm310_vm1, %v5079_v27  ;;  %4077 = vmatmul.mubr.msk.bf16.vlgmr.msra.gmra.mrb[0].mxu0 %vm310_vm1, %v2447_v29  ;;  %v2443_v29 = vld [vmem:[%s4676_s28 + $0x12d] sm:$0xff] }
  0xcf   : > { %3910 = vmatprep.mubr.msk.bf16.mxu1 %vm310_vm1, %v5081_v20  ;;  %4113 = vmatpush3.bf16.msra.mxu0 %v2847_v22  ;;  %v2462_v22 = vpack.c.bf16 %v2443_v29, %v2442_v23  ;;  %v1462_v23 = vld [vmem:[%s4676_s28 + $0x103] sm:$0xff]  ;;  %v1463_v29 = vld [vmem:[%s4676_s28 + $0x10b] sm:$0xff] }
  0xd0   : > { %4080 = vmatprep.mubr.msk.bf16.mxu0 %vm310_vm1, %v2448_v21 }
  0xd6   : > { %3911 = vmatmul.mubr.msk.bf16.gmra.mrb[24].mxu1 %vm310_vm1, %v5099_v33  ;;  %4081 = vmatmul.mubr.msk.bf16.gmra.mrb[4].mxu0 %vm310_vm1, %v2449_v50  ;;  %v2744_v50 = vld [vmem:[%s4676_s28 + $0x66] sm:$0xff] }
  0xd7   : > { %3914 = vmatprep.mubr.msk.bf16.mxu1 %vm310_vm1, %v5101_v34  ;;  %4084 = vmatprep.mubr.msk.bf16.mxu0 %vm310_vm1, %v2450_v35  ;;  %v2745_v35 = vld [vmem:[%s4676_s28 + $0x6e] sm:$0xff] }
  0xd8   : > { %v2776_v52 = vpack.c.bf16 %v2745_v35, %v2744_v50  ;;  %v1485_v50 = vpack.c.bf16 %v1467_v31, %v1466_v19 }
  0xde   : > { %3915 = vmatmul.mubr.msk.bf16.gmra.mrb[28].mxu1 %vm310_vm1, %v5117_v16  ;;  %4085 = vmatmul.mubr.msk.bf16.gmra.mrb[8].mxu0 %vm310_vm1, %v2451_v46  ;;  %v1452_v46 = vld [vmem:[%s4676_s28 + $0xb3] sm:$0xff] }
  0xdf   : > { %3918 = vmatprep.mubr.msk.bf16.mxu1 %vm310_vm1, %v5119_v30  ;;  %4088 = vmatprep.mubr.msk.bf16.mxu0 %vm310_vm1, %v2452_v48  ;;  %v1453_v48 = vld [vmem:[%s4676_s28 + $0xbb] sm:$0xff] }
  0xe0   : > { %v1478_v43 = vpack.c.bf16 %v1453_v48, %v1452_v46 }
  0xe6   : > { %3919 = vmatmul.mubr.msk.bf16.gmra.mrb[32].mxu1 %vm310_vm1, %v5133_v45  ;;  %4089 = vmatmul.mubr.msk.bf16.gmra.mrb[12].mxu0 %vm310_vm1, %v2453_v60  ;;  %v2754_v60 = vld [vmem:[%s4676_s28 + $0xb6] sm:$0xff] }
  0xe7   : > { %3924 = vmatprep.mubr.msk.bf16.mxu1 %vm310_vm1, %v4989_v41  ;;  %4092 = vmatprep.mubr.msk.bf16.mxu0 %vm310_vm1, %v2454_v57  ;;  %v2432_v41 = vld [vmem:[%s4676_s28 + $0xd5] sm:$0xff]  ;;  %v2755_v57 = vld [vmem:[%s4676_s28 + $0xbe] sm:$0xff] }
  0xe8   : > { %v2457_v11 = vpack.c.bf16 %v2433_v9, %v2432_v41  ;;  %v1480_v41 = vpack.c.bf16 %v1457_v63, %v1456_v61  ;;  %v2782_v9 = vpack.c.bf16 %v2757_v4, %v2756_v3  ;;  %v5309_v63 = vld [vmem:[%s5675_s2] ss:$0 sm:$0xff] }
  0xee   : > { %3925 = vmatmul.mubr.msk.bf16.vlgmr.msra.gmra.mrb[0].mxu1 %vm310_vm1, %v4991_v42  ;;  %4093 = vmatmul.mubr.msk.bf16.gmra.mrb[16].mxu0 %vm310_vm1, %v2455_v59  ;;  %v2437_v42 = vld [vmem:[%s4676_s28 + $0xfd] sm:$0xff] }
  0xef   : > { %3928 = vmatprep.mubr.msk.bf16.mxu1 %vm310_vm1, %v5009_v47  ;;  %4096 = vmatprep.mubr.msk.bf16.mxu0 %vm310_vm1, %v2456_v6  ;;  %v2438_v47 = vld [vmem:[%s4676_s28 + $0x105] sm:$0xff]  ;;  %v2781_v6 = vpack.c.bf16 %v2755_v57, %v2754_v60 }
  0xf0   : > { %4151 = vmatpush3.bf16.msra.mxu1 %v4658_v2  ;;  %v2436_v2 = vld [vmem:[%s4676_s28 + $0xf5] sm:$0xff]  ;;  %v2460_v18 = vpack.c.bf16 %v2439_v15, %v2438_v47  ;;  %v2760_v47 = vld [vmem:[%s4676_s28 + $0xe6] sm:$0xff] }
  0xf1   : > { %v2459_v17 = vpack.c.bf16 %v2437_v42, %v2436_v2  ;;  %v1460_v2 = vld [vmem:[%s4676_s28 + $0xf3] sm:$0xff]  ;;  %v1461_v42 = vld [vmem:[%s4676_s28 + $0xfb] sm:$0xff] }
  0xf2   : > { %v2761_v15 = vld [vmem:[%s4676_s28 + $0xee] sm:$0xff] }
  0xf6   : > { %3929 = vmatmul.mubr.msk.bf16.gmra.mrb[4].mxu1 %vm310_vm1, %v5011_v14  ;;  %4097 = vmatmul.mubr.msk.bf16.gmra.mrb[20].mxu0 %vm310_vm1, %v2457_v11  ;;  %v2440_v14 = vld [vmem:[%s4676_s28 + $0x115] sm:$0xff] }
  0xf7   : > { %3932 = vmatprep.mubr.msk.bf16.mxu1 %vm310_vm1, %v5025_v51  ;;  %4100 = vmatprep.mubr.msk.bf16.mxu0 %vm310_vm1, %v2458_v13  ;;  %v2441_v51 = vld [vmem:[%s4676_s28 + $0x11d] sm:$0xff] }
  0xf8   : > { %v2461_v21 = vpack.c.bf16 %v2441_v51, %v2440_v14  ;;  %v2758_v11 = vld [vmem:[%s4676_s28 + $0xd6] sm:$0xff]  ;;  %v2759_v13 = vld [vmem:[%s4676_s28 + $0xde] sm:$0xff]  ;;  %v1482_v14 = vpack.c.bf16 %v1461_v42, %v1460_v2  ;;  %v2784_v51 = vpack.c.bf16 %v2761_v15, %v2760_v47 }
  0xfe   : > { %3933 = vmatmul.mubr.msk.bf16.gmra.mrb[8].mxu1 %vm310_vm1, %v5027_v53  ;;  %4101 = vmatmul.mubr.msk.bf16.gmra.mrb[24].mxu0 %vm310_vm1, %v2459_v17  ;;  %v2444_v53 = vld [vmem:[%s4676_s28 + $0x135] sm:$0xff]  ;;  %v1481_v17 = vpack.c.bf16 %v1459_v10, %v1458_v7 }
  0xff   : > { %3936 = vmatprep.mubr.msk.bf16.mxu1 %vm310_vm1, %v5041_v56  ;;  %4104 = vmatprep.mubr.msk.bf16.mxu0 %vm310_vm1, %v2460_v18  ;;  %v2445_v56 = vld [vmem:[%s4676_s28 + $0x13d] sm:$0xff]  ;;  %v2783_v18 = vpack.c.bf16 %v2759_v13, %v2758_v11 }
 0x100   : > { %v2463_v24 = vpack.c.bf16 %v2445_v56, %v2444_v53  ;;  %v1464_v53 = vld [vmem:[%s4676_s28 + $0x113] sm:$0xff]  ;;  %v1465_v56 = vld [vmem:[%s4676_s28 + $0x11b] sm:$0xff] }
 0x106   : > { %3937 = vmatmul.mubr.msk.bf16.gmra.mrb[12].mxu1 %vm310_vm1, %v5043_v58  ;;  %4105 = vmatmul.mubr.msk.bf16.gmra.mrb[28].mxu0 %vm310_vm1, %v2461_v21  ;;  %v2738_v58 = vld [vmem:[%s4676_s28 + $0x36] sm:$0xff] }
 0x107   : > { %3940 = vmatprep.mubr.msk.bf16.mxu1 %vm310_vm1, %v5061_v5  ;;  %4108 = vmatprep.mubr.msk.bf16.mxu0 %vm310_vm1, %v2462_v22  ;;  %v2739_v5 = vld [vmem:[%s4676_s28 + $0x3e] sm:$0xff]  ;;  %v2762_v21 = vld [vmem:[%s4676_s28 + $0xf6] sm:$0xff] }
 0x108   : > { %v2773_v26 = vpack.c.bf16 %v2739_v5, %v2738_v58  ;;  %v2763_v22 = vld [vmem:[%s4676_s28 + $0xfe] sm:$0xff]  ;;  %v1484_v58 = vpack.c.bf16 %v1465_v56, %v1464_v53  ;;  %v2786_v5 = vpack.c.bf16 %v2765_v38, %v2764_v25 }
 0x10e   : > { %3941 = vmatmul.mubr.msk.bf16.gmra.mrb[16].mxu1 %vm310_vm1, %v5063_v8  ;;  %4109 = vmatmul.mubr.msk.bf16.gmra.mrb[32].mxu0 %vm310_vm1, %v2463_v24  ;;  %v2742_v8 = vld [vmem:[%s4676_s28 + $0x56] sm:$0xff]  ;;  %v1483_v24 = vpack.c.bf16 %v1463_v29, %v1462_v23 }
 0x10f   : > { %3944 = vmatprep.mubr.msk.bf16.mxu1 %vm310_vm1, %v5079_v27  ;;  %4114 = vmatprep.mubr.msk.bf16.mxu0 %vm310_vm1, %v2772_v28  ;;  %v2743_v27 = vld [vmem:[%s4676_s28 + $0x5e] sm:$0xff]  ;;  %v2785_v28 = vpack.c.bf16 %v2763_v22, %v2762_v21 }
 0x110   : > { %v2775_v36 = vpack.c.bf16 %v2743_v27, %v2742_v8  ;;  %v2768_v8 = vld [vmem:[%s4676_s28 + $0x126] sm:$0xff]  ;;  %v2769_v27 = vld [vmem:[%s4676_s28 + $0x12e] sm:$0xff] }
 0x116   : > { %3945 = vmatmul.mubr.msk.bf16.gmra.mrb[20].mxu1 %vm310_vm1, %v5081_v20  ;;  %4115 = vmatmul.mubr.msk.bf16.vlgmr.msra.gmra.mrb[0].mxu0 %vm310_vm1, %v2773_v26  ;;  %v2746_v20 = vld [vmem:[%s4676_s28 + $0x76] sm:$0xff] }
 0x117   : > { %3948 = vmatprep.mubr.msk.bf16.mxu1 %vm310_vm1, %v5099_v33  ;;  %4118 = vmatprep.mubr.msk.bf16.mxu0 %vm310_vm1, %v2774_v40  ;;  %v2747_v33 = vld [vmem:[%s4676_s28 + $0x7e] sm:$0xff]  ;;  %v2766_v26 = vld [vmem:[%s4676_s28 + $0x116] sm:$0xff] }
 0x118   : > { %v2777_v39 = vpack.c.bf16 %v2747_v33, %v2746_v20  ;;  %v2767_v40 = vld [vmem:[%s4676_s28 + $0x11e] sm:$0xff] }
 0x119   : > { %v2787_v35 = vpack.c.bf16 %v2767_v40, %v2766_v26  ;;  %v2771_v20 = vld [vmem:[%s4676_s28 + $0x13e] sm:$0xff] }
 0x11e   : > { %3949 = vmatmul.mubr.msk.bf16.gmra.mrb[24].mxu1 %vm310_vm1, %v5101_v34  ;;  %4119 = vmatmul.mubr.msk.bf16.gmra.mrb[4].mxu0 %vm310_vm1, %v2775_v36  ;;  %v1140_v34 = vld [vmem:[%s4676_s28 + $0x122] sm:$0xff]  ;;  %v2788_v36 = vpack.c.bf16 %v2769_v27, %v2768_v8 }
 0x11f   : > { %3952 = vmatprep.mubr.msk.bf16.mxu1 %vm310_vm1, %v5117_v16  ;;  %4122 = vmatprep.mubr.msk.bf16.mxu0 %vm310_vm1, %v2776_v52  ;;  %v2751_v16 = vld [vmem:[%s4676_s28 + $0x9e] sm:$0xff]  ;;  %v1159_v49 = vpack.c.bf16 %v1141_v1, %v1140_v34  ;;  %v2770_v52 = vld [vmem:[%s4676_s28 + $0x136] sm:$0xff] }
 0x120   : > { %v2779_v32 = vpack.c.bf16 %v2751_v16, %v2750_v12  ;;  %v2789_v33 = vpack.c.bf16 %v2771_v20, %v2770_v52 }
 0x126   : > { %3953 = vmatmul.mubr.msk.bf16.gmra.mrb[28].mxu1 %vm310_vm1, %v5119_v30  ;;  %4123 = vmatmul.mubr.msk.bf16.gmra.mrb[8].mxu0 %vm310_vm1, %v2777_v39  ;;  %v2752_v30 = vld [vmem:[%s4676_s28 + $0xa6] sm:$0xff] }
 0x127   : > { %3956 = vmatprep.mubr.msk.bf16.mxu1 %vm310_vm1, %v5133_v45  ;;  %4126 = vmatprep.mubr.msk.bf16.mxu0 %vm310_vm1, %v2778_v44  ;;  %v2780_v54 = vpack.c.bf16 %v2753_v0, %v2752_v30  ;;  %v1455_v45 = vld [vmem:[%s4676_s28 + $0xcb] sm:$0xff] }
 0x128   : > { %v1479_v59 = vpack.c.bf16 %v1455_v45, %v1454_v55 }
 0x12e   : > { %3957 = vmatmul.mubr.msk.bf16.gmra.mrb[32].mxu1 %vm310_vm1, %v1159_v49  ;;  %4127 = vmatmul.mubr.msk.bf16.gmra.mrb[12].mxu0 %vm310_vm1, %v2779_v32 }
 0x12f   : > { %3982 = vmatprep.mubr.msk.bf16.mxu1 %vm310_vm1, %v1478_v43  ;;  %4130 = vmatprep.mubr.msk.bf16.mxu0 %vm310_vm1, %v2780_v54 }
 0x136   : > { %3983 = vmatmul.mubr.msk.bf16.vlgmr.msra.gmra.mrb[20].mxu1 %vm310_vm1, %v1479_v59  ;;  %4131 = vmatmul.mubr.msk.bf16.gmra.mrb[16].mxu0 %vm310_vm1, %v2781_v6  ;;  %v5314_v59 = vld [vmem:[%s5676_s3] ss:$0 sm:$0xff] }
 0x137   : > { %3986 = vmatprep.mubr.msk.bf16.mxu1 %vm310_vm1, %v1480_v41  ;;  %4134 = vmatprep.mubr.msk.bf16.mxu0 %vm310_vm1, %v2782_v9 }
 0x13e   : > { %3987 = vmatmul.mubr.msk.bf16.gmra.mrb[24].mxu1 %vm310_vm1, %v1481_v17  ;;  %4135 = vmatmul.mubr.msk.bf16.gmra.mrb[20].mxu0 %vm310_vm1, %v2783_v18 }
 0x13f   : > { %3990 = vmatprep.mubr.msk.bf16.mxu1 %vm310_vm1, %v1482_v14  ;;  %4138 = vmatprep.mubr.msk.bf16.mxu0 %vm310_vm1, %v2784_v51 }
 0x146   : > { %3991 = vmatmul.mubr.msk.bf16.gmra.mrb[28].mxu1 %vm310_vm1, %v1483_v24  ;;  %4139 = vmatmul.mubr.msk.bf16.gmra.mrb[24].mxu0 %vm310_vm1, %v2785_v28 }
 0x147   : > { %3994 = vmatprep.mubr.msk.bf16.mxu1 %vm310_vm1, %v1484_v58  ;;  %4142 = vmatprep.mubr.msk.bf16.mxu0 %vm310_vm1, %v2786_v5 }
 0x14e   : > { %3995 = vmatmul.mubr.msk.bf16.gmra.mrb[32].mxu1 %vm310_vm1, %v1485_v50  ;;  %4143 = vmatmul.mubr.msk.bf16.gmra.mrb[28].mxu0 %vm310_vm1, %v2787_v35 }
 0x14f   : > { %4146 = vmatprep.mubr.msk.bf16.mxu0 %vm310_vm1, %v2788_v36 }
 0x156   : > { %4147 = vmatmul.mubr.msk.bf16.gmra.mrb[32].mxu0 %vm310_vm1, %v2789_v33 }
 0x1c1   : > { %v3926_v37 = vpop.f32.mrb[0].mxu1 }
 0x1c2   : > { %v1253_v62 = vpop.f32.mrb[1].mxu1 }
 0x1c3   : > { %v3927_v39 = vpop.f32.mrb[2].mxu1 }
 0x1c4   : > { %v1256_v44 = vpop.f32.mrb[3].mxu1 }
 0x1c9   : > { %v3930_v34 = vpop.f32.mrb[4].mxu1 }
 0x1ca   : > { %v1269_v1 = vpop.f32.mrb[5].mxu1 }
 0x1cb   : > { %v3931_v12 = vpop.f32.mrb[6].mxu1 }
 0x1cc   : > { %v1272_v16 = vpop.f32.mrb[7].mxu1 }
 0x1d1   : > { %v5282_v46 = vpop.f32.mrb[8].mxu1 }
 0x1d2   : > { %v5284_v48 = vpop.f32.mrb[9].mxu1 }
 0x1d3   : > { %v5286_v30 = vpop.f32.mrb[10].mxu1 }
 0x1d4   : > { %v5288_v0 = vpop.f32.mrb[11].mxu1 }
 0x1d9   : > { %v5290_v49 = vpop.f32.mrb[12].mxu1 }
 0x1da   : > { %v5292_v32 = vpop.f32.mrb[13].mxu1 }
 0x1db   : > { %v5294_v43 = vpop.f32.mrb[14].mxu1 }
 0x1dc   : > { %v5296_v54 = vpop.f32.mrb[15].mxu1 }
 0x1e1   : > { %v5298_v55 = vpop.f32.mrb[16].mxu1 }
 0x1e2   : > { %v5300_v45 = vpop.f32.mrb[17].mxu1 }
 0x1e3   : > { %v5302_v60 = vpop.f32.mrb[18].mxu1 }
 0x1e4   : > { %v5304_v57 = vpop.f32.mrb[19].mxu1 }
 0x1e9   : > { %v4116_v61 = vpop.f32.mrb[0].mxu0 }
 0x1ea   : > { %v4152_v3 = vadd.f32 %v4116_v61, %v3926_v37  ;;  %v2883_v4 = vpop.f32.mrb[1].mxu0 }
 0x1eb   : > { %v4153_v6 = vadd.f32 %v2883_v4, %v1253_v62  ;;  %v4117_v41 = vpop.f32.mrb[2].mxu0 }
 0x1ec   : > { %v3071_v9 = vmul.f32 %v4152_v3, %v5309_v63  ;;  %v4154_v7 = vadd.f32 %v4117_v41, %v3927_v39  ;;  %v2886_v10 = vpop.f32.mrb[3].mxu0 }
 0x1ed   : > { %v3069_v11 = vmul.f32 %v4153_v6, %v5309_v63  ;;  %v4155_v13 = vadd.f32 %v2886_v10, %v1256_v44 }
 0x1ee   : > { %v5319_v2 = vadd.f32 %v5314_v59, %v3071_v9  ;;  %v3072_v42 = vmul.f32 %v4154_v7, %v5309_v63 }
 0x1ef   : > { %v5323_v47 = vadd.f32 %v5314_v59, %v3069_v11  ;;  %v3070_v15 = vmul.f32 %v4155_v13, %v5309_v63 }
 0x1f0   : > { %v3150_v17 = vsub.f32 0.0, %v5319_v2  ;;  %v5328_v18 = vadd.f32 %v5314_v59, %v3072_v42 }
 0x1f1   : > { %v3148_v14 = vsub.f32 0.0, %v5323_v47  ;;  %v5332_v51 = vadd.f32 %v5314_v59, %v3070_v15  ;;  %v4120_v23 = vpop.f32.mrb[4].mxu0 }
 0x1f2   : > { %v3188_v29 = vmul.f32 1.442695, %v3150_v17  ;;  %v3151_v21 = vsub.f32 0.0, %v5328_v18  ;;  %v4156_v22 = vadd.f32 %v4120_v23, %v3930_v34  ;;  %v2899_v53 = vpop.f32.mrb[5].mxu0 }
 0x1f3   : > { %v3184_v56 = vmul.f32 1.442695, %v3148_v14  ;;  %v3149_v25 = vsub.f32 0.0, %v5332_v51  ;;  %v4157_v38 = vadd.f32 %v2899_v53, %v1269_v1  ;;  %v4121_v24 = vpop.f32.mrb[6].mxu0 }
 0x1f4   : > { %4460 = vpow2.f32 %v3188_v29  ;;  %v3190_v28 = vmul.f32 1.442695, %v3151_v21  ;;  %v3075_v58 = vmul.f32 %v4156_v22, %v5309_v63  ;;  %v4158_v5 = vadd.f32 %v4121_v24, %v3931_v12  ;;  %v2902_v19 = vpop.f32.mrb[7].mxu0 }
 0x1f5   : > { %4462 = vpow2.f32 %v3184_v56  ;;  %v3186_v31 = vmul.f32 1.442695, %v3149_v25  ;;  %v3073_v26 = vmul.f32 %v4157_v38, %v5309_v63  ;;  %v4159_v40 = vadd.f32 %v2902_v19, %v1272_v16 }
 0x1f6   : > { %4464 = vpow2.f32 %v3190_v28  ;;  %v5339_v8 = vadd.f32 %v5314_v59, %v3075_v58  ;;  %v3076_v27 = vmul.f32 %v4158_v5, %v5309_v63 }
 0x1f7   : > { %4466 = vpow2.f32 %v3186_v31  ;;  %v5343_v50 = vadd.f32 %v5314_v59, %v3073_v26  ;;  %v3074_v35 = vmul.f32 %v4159_v40, %v5309_v63 }
 0x1f8   : > { %v3154_v36 = vsub.f32 0.0, %v5339_v8  ;;  %v5348_v52 = vadd.f32 %v5314_v59, %v3076_v27 }
 0x1f9   : > { %v3152_v20 = vsub.f32 0.0, %v5343_v50  ;;  %v5352_v33 = vadd.f32 %v5314_v59, %v3074_v35  ;;  %v4124_v37 = vpop.f32.mrb[8].mxu0 }
 0x1fa   : > { %v3196_v62 = vmul.f32 1.442695, %v3154_v36  ;;  %v3155_v39 = vsub.f32 0.0, %v5348_v52  ;;  %v4160_v44 = vadd.f32 %v4124_v37, %v5282_v46  ;;  %v2915_v34 = vpop.f32.mrb[9].mxu0 }
 0x1fb   : > { %v3192_v1 = vmul.f32 1.442695, %v3152_v20  ;;  %v3153_v12 = vsub.f32 0.0, %v5352_v33  ;;  %v4161_v16 = vadd.f32 %v2915_v34, %v5284_v48  ;;  %v4125_v61 = vpop.f32.mrb[10].mxu0 }
 0x1fc   : > { %4468 = vpow2.f32 %v3196_v62  ;;  %v3198_v3 = vmul.f32 1.442695, %v3155_v39  ;;  %v3079_v4 = vmul.f32 %v4160_v44, %v5309_v63  ;;  %v4162_v6 = vadd.f32 %v4125_v61, %v5286_v30  ;;  %v2918_v41 = vpop.f32.mrb[11].mxu0 }
 0x1fd   : > { %4470 = vpow2.f32 %v3192_v1  ;;  %v3194_v9 = vmul.f32 1.442695, %v3153_v12  ;;  %v3077_v7 = vmul.f32 %v4161_v16, %v5309_v63  ;;  %v4163_v46 = vadd.f32 %v2918_v41, %v5288_v0 }
 0x1fe   : > { %v4461_v10 = vpop.eup %4460  ;;  %4472 = vpow2.f32 %v3198_v3  ;;  %v5363_v11 = vadd.f32 %v5314_v59, %v3079_v4  ;;  %v3080_v48 = vmul.f32 %v4162_v6, %v5309_v63 }
 0x1ff   : > { %v4463_v13 = vpop.eup %4462  ;;  %v3258_v42 = vadd.f32 1.0, %v4461_v10  ;;  %4474 = vpow2.f32 %v3194_v9  ;;  %v5367_v15 = vadd.f32 %v5314_v59, %v3077_v7  ;;  %v3078_v30 = vmul.f32 %v4163_v46, %v5309_v63 }
 0x200   : > { %v4465_v17 = vpop.eup %4464  ;;  %v3256_v14 = vadd.f32 1.0, %v4463_v13  ;;  %v3158_v23 = vsub.f32 0.0, %v5363_v11  ;;  %v5372_v0 = vadd.f32 %v5314_v59, %v3080_v48 }
 0x201   : > { %v4467_v29 = vpop.eup %4466  ;;  %4476 = vrcp.f32 %v3258_v42  ;;  %v3259_v21 = vadd.f32 1.0, %v4465_v17  ;;  %v3156_v22 = vsub.f32 0.0, %v5367_v15  ;;  %v5376_v53 = vadd.f32 %v5314_v59, %v3078_v30  ;;  %v4128_v56 = vpop.f32.mrb[12].mxu0 }
 0x202   : > { %4478 = vrcp.f32 %v3256_v14  ;;  %v3257_v25 = vadd.f32 1.0, %v4467_v29  ;;  %v3204_v38 = vmul.f32 1.442695, %v3158_v23  ;;  %v3159_v24 = vsub.f32 0.0, %v5372_v0  ;;  %v2931_v28 = vpop.f32.mrb[13].mxu0 }
 0x203   : > { %4480 = vrcp.f32 %v3259_v21  ;;  %v3200_v58 = vmul.f32 1.442695, %v3156_v22  ;;  %v3157_v5 = vsub.f32 0.0, %v5376_v53  ;;  %v4164_v19 = vadd.f32 %v4128_v56, %v5290_v49  ;;  %v4129_v31 = vpop.f32.mrb[14].mxu0 }
 0x204   : > { %4482 = vrcp.f32 %v3257_v25  ;;  %v3206_v26 = vmul.f32 1.442695, %v3159_v24  ;;  %v4165_v40 = vadd.f32 %v2931_v28, %v5292_v32  ;;  %v4166_v27 = vadd.f32 %v4129_v31, %v5294_v43  ;;  %v2934_v35 = vpop.f32.mrb[15].mxu0 }
 0x205   : > { %4484 = vpow2.f32 %v3204_v38  ;;  %v3202_v36 = vmul.f32 1.442695, %v3157_v5  ;;  %v3083_v20 = vmul.f32 %v4164_v19, %v5309_v63  ;;  %v4167_v37 = vadd.f32 %v2934_v35, %v5296_v54 }
 0x206   : > { %v4469_v62 = vpop.eup %4468  ;;  %4486 = vpow2.f32 %v3200_v58  ;;  %v3081_v49 = vmul.f32 %v4165_v40, %v5309_v63  ;;  %v3084_v39 = vmul.f32 %v4166_v27, %v5309_v63 }
 0x207   : > { %v4471_v44 = vpop.eup %4470  ;;  %v3262_v34 = vadd.f32 1.0, %v4469_v62  ;;  %4488 = vpow2.f32 %v3206_v26  ;;  %v5389_v32 = vadd.f32 %v5314_v59, %v3083_v20  ;;  %v3082_v43 = vmul.f32 %v4167_v37, %v5309_v63 }
 0x208   : > { %v4473_v1 = vpop.eup %4472  ;;  %v3260_v12 = vadd.f32 1.0, %v4471_v44  ;;  %4490 = vpow2.f32 %v3202_v36  ;;  %v5393_v54 = vadd.f32 %v5314_v59, %v3081_v49  ;;  %v5396_v16 = vadd.f32 %v5314_v59, %v3084_v39 }
 0x209   : > { %v5398_v61 = vpop.f32.mrb[20].mxu1  ;;  %v4475_v3 = vpop.eup %4474  ;;  %4492 = vrcp.f32 %v3262_v34  ;;  %v3263_v4 = vadd.f32 1.0, %v4473_v1  ;;  %v3162_v6 = vsub.f32 0.0, %v5389_v32  ;;  %v5402_v41 = vadd.f32 %v5314_v59, %v3082_v43 }
 0x20a   : > { %v4132_v9 = vpop.f32.mrb[16].mxu0  ;;  %v5404_v7 = vpop.f32.mrb[21].mxu1  ;;  %4494 = vrcp.f32 %v3260_v12  ;;  %v3261_v46 = vadd.f32 1.0, %v4475_v3  ;;  %v3160_v10 = vsub.f32 0.0, %v5393_v54  ;;  %v3163_v48 = vsub.f32 0.0, %v5396_v16 }
 0x20b   : > { %v2947_v13 = vpop.f32.mrb[17].mxu0  ;;  %v5408_v42 = vpop.f32.mrb[22].mxu1  ;;  %4496 = vrcp.f32 %v3263_v4  ;;  %v3212_v17 = vmul.f32 1.442695, %v3162_v6  ;;  %v3161_v14 = vsub.f32 0.0, %v5402_v41  ;;  %v4168_v23 = vadd.f32 %v4132_v9, %v5298_v55 }
 0x20c   : > { %v4477_v30 = vpop.eup %4476  ;;  %v4133_v29 = vpop.f32.mrb[18].mxu0  ;;  %4498 = vrcp.f32 %v3261_v46  ;;  %v3208_v25 = vmul.f32 1.442695, %v3160_v10  ;;  %v3214_v38 = vmul.f32 1.442695, %v3163_v48 }
 0x20d   : > { %v5417_v21 = vpop.f32.mrb[23].mxu1  ;;  %v4479_v22 = vpop.eup %4478  ;;  %v3330_v56 = vmul.f32 %v4477_v30, %v5319_v2  ;;  %4500 = vpow2.f32 %v3212_v17  ;;  %v3210_v5 = vmul.f32 1.442695, %v3161_v14  ;;  %v3087_v19 = vmul.f32 %v4168_v23, %v5309_v63 }
 0x20e   : > { %v2950_v24 = vpop.f32.mrb[19].mxu0  ;;  %v4481_v28 = vpop.eup %4480  ;;  %v3328_v58 = vmul.f32 %v4479_v22, %v5323_v47  ;;  %4502 = vpow2.f32 %v3208_v25  ;;  %v4169_v2 = vadd.f32 %v2947_v13, %v5300_v45  ;;  %v4170_v26 = vadd.f32 %v4133_v29, %v5302_v60 }
 0x20f   : > { %v4483_v55 = vpop.eup %4482  ;;  %3367 = vst.msk [vmem:[%s5413_s21 + $0x10] sm:$0xff] %vm3364_vm2, %v3330_v56  ;;  %v3331_v31 = vmul.f32 %v4481_v28, %v5328_v18  ;;  %4504 = vpow2.f32 %v3214_v38  ;;  %v5431_v27 = vadd.f32 %v5314_v59, %v3087_v19  ;;  %v4171_v35 = vadd.f32 %v2950_v24, %v5304_v57 }
 0x210   : > { %v4485_v40 = vpop.eup %4484  ;;  %3365 = vst.msk [vmem:[%s5413_s21] sm:$0xff] %vm3364_vm2, %v3328_v58  ;;  %v3329_v47 = vmul.f32 %v4483_v55, %v5332_v51  ;;  %4506 = vpow2.f32 %v3210_v5  ;;  %v3085_v45 = vmul.f32 %v4169_v2, %v5309_v63  ;;  %v3088_v60 = vmul.f32 %v4170_v26, %v5309_v63 }
 0x211   : > { %v4487_v36 = vpop.eup %4486  ;;  %3368 = vst.msk [vmem:[%s5413_s21 + $0x18] sm:$0xff] %vm3364_vm2, %v3331_v31  ;;  %v3266_v18 = vadd.f32 1.0, %v4485_v40  ;;  %v5438_v20 = vpop.f32.mrb[24].mxu1  ;;  %v3166_v62 = vsub.f32 0.0, %v5431_v27  ;;  %v3086_v49 = vmul.f32 %v4171_v35, %v5309_v63 }
 0x212   : > { %v4489_v37 = vpop.eup %4488  ;;  %3366 = vst.msk [vmem:[%s5413_s21 + $0x8] sm:$0xff] %vm3364_vm2, %v3329_v47  ;;  %v3264_v51 = vadd.f32 1.0, %v4487_v36  ;;  %v4136_v57 = vpop.f32.mrb[20].mxu0  ;;  %v5447_v43 = vadd.f32 %v5314_v59, %v3085_v45  ;;  %v5450_v1 = vadd.f32 %v5314_v59, %v3088_v60 }
 0x213   : > { %v5444_v39 = vpop.f32.mrb[25].mxu1  ;;  %v4491_v44 = vpop.eup %4490  ;;  %4508 = vrcp.f32 %v3266_v18  ;;  %v3267_v34 = vadd.f32 1.0, %v4489_v37  ;;  %v3220_v9 = vmul.f32 1.442695, %v3166_v62  ;;  %v5455_v46 = vadd.f32 %v5314_v59, %v3086_v49 }
 0x214   : > { %v2963_v12 = vpop.f32.mrb[21].mxu0  ;;  %v5452_v3 = vpop.f32.mrb[26].mxu1  ;;  %4510 = vrcp.f32 %v3264_v51  ;;  %v3265_v6 = vadd.f32 1.0, %v4491_v44  ;;  %v3164_v17 = vsub.f32 0.0, %v5447_v43  ;;  %v3167_v14 = vsub.f32 0.0, %v5450_v1 }
 0x215   : > { %v4493_v4 = vpop.eup %4492  ;;  %v4137_v10 = vpop.f32.mrb[22].mxu0  ;;  %4512 = vrcp.f32 %v3267_v34  ;;  %v3165_v56 = vsub.f32 0.0, %v5455_v46  ;;  %v4172_v25 = vadd.f32 %v4136_v57, %v5398_v61  ;;  %v4173_v55 = vadd.f32 %v2963_v12, %v5404_v7 }
 0x216   : > { %v5457_v48 = vpop.f32.mrb[27].mxu1  ;;  %v4495_v13 = vpop.eup %4494  ;;  %v3334_v30 = vmul.f32 %v4493_v4, %v5339_v8  ;;  %4514 = vrcp.f32 %v3265_v6  ;;  %v3216_v24 = vmul.f32 1.442695, %v3164_v17  ;;  %v3222_v28 = vmul.f32 1.442695, %v3167_v14 }
 0x217   : > { %v2966_v23 = vpop.f32.mrb[23].mxu0  ;;  %v4497_v29 = vpop.eup %4496  ;;  %v3332_v22 = vmul.f32 %v4495_v13, %v5343_v50  ;;  %4516 = vpow2.f32 %v3220_v9  ;;  %v3218_v5 = vmul.f32 1.442695, %v3165_v56  ;;  %v3091_v19 = vmul.f32 %v4172_v25, %v5309_v63 }
 0x218   : > { %v4499_v38 = vpop.eup %4498  ;;  %3371 = vst.msk [vmem:[%s5413_s21 + $0x30] sm:$0xff] %vm3364_vm2, %v3334_v30  ;;  %v3335_v8 = vmul.f32 %v4497_v29, %v5348_v52  ;;  %4518 = vpow2.f32 %v3216_v24  ;;  %v4174_v52 = vadd.f32 %v4137_v10, %v5408_v42  ;;  %v4175_v2 = vadd.f32 %v2966_v23, %v5417_v21 }
 0x219   : > { %v4501_v58 = vpop.eup %4500  ;;  %3369 = vst.msk [vmem:[%s5413_s21 + $0x20] sm:$0xff] %vm3364_vm2, %v3332_v22  ;;  %v3333_v50 = vmul.f32 %v4499_v38, %v5352_v33  ;;  %v5477_v26 = vpop.f32.mrb[28].mxu1  ;;  %4520 = vpow2.f32 %v3222_v28  ;;  %v5482_v47 = vadd.f32 %v5314_v59, %v3091_v19  ;;  %v3089_v7 = vmul.f32 %v4173_v55, %v5309_v63 }
 0x21a   : > { %v4503_v61 = vpop.eup %4502  ;;  %3372 = vst.msk [vmem:[%s5413_s21 + $0x38] sm:$0xff] %vm3364_vm2, %v3335_v8  ;;  %v3270_v31 = vadd.f32 1.0, %v4501_v58  ;;  %v4140_v35 = vpop.f32.mrb[24].mxu0  ;;  %v3092_v21 = vmul.f32 %v4174_v52, %v5309_v63  ;;  %v3090_v45 = vmul.f32 %v4175_v2, %v5309_v63 }
 0x21b   : > { %v4505_v40 = vpop.eup %4504  ;;  %3370 = vst.msk [vmem:[%s5413_s21 + $0x28] sm:$0xff] %vm3364_vm2, %v3333_v50  ;;  %v3268_v33 = vadd.f32 1.0, %v4503_v61  ;;  %v5485_v36 = vpop.f32.mrb[29].mxu1  ;;  %v3170_v62 = vsub.f32 0.0, %v5482_v47  ;;  %v5493_v49 = vadd.f32 %v5314_v59, %v3089_v7  ;;  %v4176_v6 = vadd.f32 %v4140_v35, %v5438_v20 }
 0x21c   : > { %v4507_v18 = vpop.eup %4506  ;;  %4522 = vrcp.f32 %v3270_v31  ;;  %v3271_v42 = vadd.f32 1.0, %v4505_v40  ;;  %v2979_v60 = vpop.f32.mrb[25].mxu0  ;;  %v5498_v12 = vadd.f32 %v5314_v59, %v3092_v21  ;;  %v5501_v4 = vadd.f32 %v5314_v59, %v3090_v45 }
 0x21d   : > { %v5489_v37 = vpop.f32.mrb[30].mxu1  ;;  %4524 = vrcp.f32 %v3268_v33  ;;  %v3269_v51 = vadd.f32 1.0, %v4507_v18  ;;  %v4141_v57 = vpop.f32.mrb[26].mxu0  ;;  %v3228_v30 = vmul.f32 1.442695, %v3170_v62  ;;  %v3168_v17 = vsub.f32 0.0, %v5493_v49 }
 0x21e   : > { %v5495_v44 = vpop.f32.mrb[31].mxu1  ;;  %v4509_v34 = vpop.eup %4508  ;;  %4526 = vrcp.f32 %v3271_v42  ;;  %v3171_v29 = vsub.f32 0.0, %v5498_v12  ;;  %v3169_v22 = vsub.f32 0.0, %v5501_v4  ;;  %v3095_v25 = vmul.f32 %v4176_v6, %v5309_v63 }
 0x21f   : > { %v2982_v9 = vpop.f32.mrb[27].mxu0  ;;  %v4511_v10 = vpop.eup %4510  ;;  %v3338_v13 = vmul.f32 %v4509_v34, %v5363_v11  ;;  %4528 = vrcp.f32 %v3269_v51  ;;  %v3224_v11 = vmul.f32 1.442695, %v3168_v17  ;;  %v4177_v28 = vadd.f32 %v2979_v60, %v5444_v39 }
 0x220   : > { %v4513_v14 = vpop.eup %4512  ;;  %v3336_v23 = vmul.f32 %v4511_v10, %v5367_v15  ;;  %4530 = vpow2.f32 %v3218_v5  ;;  %v3230_v8 = vmul.f32 1.442695, %v3171_v29  ;;  %v3226_v24 = vmul.f32 1.442695, %v3169_v22 }
 0x221   : > { %v4515_v56 = vpop.eup %4514  ;;  %3375 = vst.msk [vmem:[%s5413_s21 + $0x50] sm:$0xff] %vm3364_vm2, %v3338_v13  ;;  %v3339_v20 = vmul.f32 %v4513_v14, %v5372_v0  ;;  %4532 = vpow2.f32 %v3228_v30  ;;  %v5517_v58 = vpop.f32.mrb[32].mxu1  ;;  %v5522_v0 = vadd.f32 %v5314_v59, %v3095_v25  ;;  %v4178_v5 = vadd.f32 %v4141_v57, %v5452_v3 }
 0x222   : > { %v4517_v38 = vpop.eup %4516  ;;  %3373 = vst.msk [vmem:[%s5413_s21 + $0x40] sm:$0xff] %vm3364_vm2, %v3336_v23  ;;  %v3337_v15 = vmul.f32 %v4515_v56, %v5376_v53  ;;  %4534 = vpow2.f32 %v3224_v11  ;;  %v4144_v19 = vpop.f32.mrb[28].mxu0  ;;  %v3093_v53 = vmul.f32 %v4177_v28, %v5309_v63  ;;  %v4179_v39 = vadd.f32 %v2982_v9, %v5457_v48 }
 0x223   : > { %3376 = vst.msk [vmem:[%s5413_s21 + $0x58] sm:$0xff] %vm3364_vm2, %v3339_v20  ;;  %v3274_v50 = vadd.f32 1.0, %v4517_v38  ;;  %v5525_v55 = vpop.f32.mrb[33].mxu1  ;;  %v4519_v61 = vpop.eup %4518  ;;  %4536 = vpow2.f32 %v3230_v8  ;;  %v4180_v31 = vadd.f32 %v4144_v19, %v5477_v26  ;;  %v3174_v3 = vsub.f32 0.0, %v5522_v0 }
 0x224   : > { %3374 = vst.msk [vmem:[%s5413_s21 + $0x48] sm:$0xff] %vm3364_vm2, %v3337_v15  ;;  %v2995_v52 = vpop.f32.mrb[29].mxu0  ;;  %v5532_v2 = vpop.f32.mrb[34].mxu1  ;;  %v3272_v33 = vadd.f32 1.0, %v4519_v61  ;;  %v3096_v7 = vmul.f32 %v4178_v5, %v5309_v63  ;;  %v5539_v48 = vadd.f32 %v5314_v59, %v3093_v53  ;;  %v3094_v26 = vmul.f32 %v4179_v39, %v5309_v63 }
 0x225   : > { %v4521_v40 = vpop.eup %4520  ;;  %4538 = vrcp.f32 %v3274_v50  ;;  %v4145_v35 = vpop.f32.mrb[30].mxu0  ;;  %v3236_v62 = vmul.f32 1.442695, %v3174_v3  ;;  %v3099_v17 = vmul.f32 %v4180_v31, %v5309_v63  ;;  %v4181_v22 = vadd.f32 %v2995_v52, %v5485_v36 }
 0x226   : > { %v5536_v18 = vpop.f32.mrb[35].mxu1  ;;  %v4523_v42 = vpop.eup %4522  ;;  %v3275_v21 = vadd.f32 1.0, %v4521_v40  ;;  %4540 = vpow2.f32 %v3226_v24  ;;  %v5544_v57 = vadd.f32 %v5314_v59, %v3096_v7  ;;  %v3172_v9 = vsub.f32 0.0, %v5539_v48 }
 0x227   : > { %v2998_v45 = vpop.f32.mrb[31].mxu0  ;;  %v4525_v60 = vpop.eup %4524  ;;  %v3342_v51 = vmul.f32 %v4523_v42, %v5389_v32  ;;  %4542 = vrcp.f32 %v3272_v33  ;;  %v5549_v10 = vadd.f32 %v5314_v59, %v3094_v26  ;;  %v5564_v11 = vadd.f32 %v5314_v59, %v3099_v17 }
 0x228   : > { %v4527_v34 = vpop.eup %4526  ;;  %v3340_v6 = vmul.f32 %v4525_v60, %v5393_v54  ;;  %4544 = vrcp.f32 %v3275_v21  ;;  %v3175_v30 = vsub.f32 0.0, %v5544_v57  ;;  %v3232_v23 = vmul.f32 1.442695, %v3172_v9 }
 0x229   : > { %v4529_v13 = vpop.eup %4528  ;;  %3379 = vst.msk [vmem:[%s5413_s21 + $0x70] sm:$0xff] %vm3364_vm2, %v3342_v51  ;;  %v3343_v32 = vmul.f32 %v4527_v34, %v5396_v16  ;;  %4546 = vpow2.f32 %v3236_v62  ;;  %v3173_v29 = vsub.f32 0.0, %v5549_v10  ;;  %v4182_v25 = vadd.f32 %v4145_v35, %v5489_v37  ;;  %v4148_v38 = vpop.f32.mrb[32].mxu0 }
 0x22a   : > { %v4531_v14 = vpop.eup %4530  ;;  %3377 = vst.msk [vmem:[%s5413_s21 + $0x60] sm:$0xff] %vm3364_vm2, %v3340_v6  ;;  %v3341_v54 = vmul.f32 %v4529_v13, %v5402_v41  ;;  %v3238_v20 = vmul.f32 1.442695, %v3175_v30  ;;  %4548 = vpow2.f32 %v3232_v23  ;;  %v3097_v8 = vmul.f32 %v4181_v22, %v5309_v63  ;;  %v3011_v24 = vpop.f32.mrb[33].mxu0 }
 0x22b   : > { %v4533_v56 = vpop.eup %4532  ;;  %3380 = vst.msk [vmem:[%s5413_s21 + $0x78] sm:$0xff] %vm3364_vm2, %v3343_v32  ;;  %v3273_v16 = vadd.f32 1.0, %v4531_v14  ;;  %v3234_v41 = vmul.f32 1.442695, %v3173_v29  ;;  %v3178_v28 = vsub.f32 0.0, %v5564_v11  ;;  %v3100_v50 = vmul.f32 %v4182_v25, %v5309_v63  ;;  %v4149_v19 = vpop.f32.mrb[34].mxu0 }
 0x22c   : > { %3378 = vst.msk [vmem:[%s5413_s21 + $0x68] sm:$0xff] %vm3364_vm2, %v3341_v54  ;;  %v3278_v15 = vadd.f32 1.0, %v4533_v56  ;;  %v4535_v36 = vpop.eup %4534  ;;  %v4183_v5 = vadd.f32 %v2998_v45, %v5495_v44  ;;  %v5574_v53 = vadd.f32 %v5314_v59, %v3097_v8  ;;  %v4184_v39 = vadd.f32 %v4148_v38, %v5517_v58  ;;  %v3014_v31 = vpop.f32.mrb[35].mxu0 }
 0x22d   : > { %4550 = vrcp.f32 %v3273_v16  ;;  %v4537_v61 = vpop.eup %4536  ;;  %v3276_v37 = vadd.f32 1.0, %v4535_v36  ;;  %v3244_v33 = vmul.f32 1.442695, %v3178_v28  ;;  %v5578_v3 = vadd.f32 %v5314_v59, %v3100_v50 }
 0x22e   : > { %4552 = vrcp.f32 %v3278_v15  ;;  %v3279_v40 = vadd.f32 1.0, %v4537_v61  ;;  %v3176_v35 = vsub.f32 0.0, %v5574_v53  ;;  %v3098_v42 = vmul.f32 %v4183_v5, %v5309_v63 }
 0x22f   : > { %v4539_v52 = vpop.eup %4538  ;;  %4554 = vpow2.f32 %v3238_v20  ;;  %v3179_v26 = vsub.f32 0.0, %v5578_v3  ;;  %v3103_v45 = vmul.f32 %v4184_v39, %v5309_v63  ;;  %v4187_v14 = vadd.f32 %v3014_v31, %v5536_v18 }
 0x230   : > { %v4541_v7 = vpop.eup %4540  ;;  %v3346_v44 = vmul.f32 %v4539_v52, %v5431_v27  ;;  %4556 = vrcp.f32 %v3276_v37  ;;  %v3240_v27 = vmul.f32 1.442695, %v3176_v35  ;;  %v5589_v62 = vadd.f32 %v5314_v59, %v3098_v42 }
 0x231   : > { %v4543_v21 = vpop.eup %4542  ;;  %4558 = vrcp.f32 %v3279_v40  ;;  %v3277_v58 = vadd.f32 1.0, %v4541_v7  ;;  %v3246_v9 = vmul.f32 1.442695, %v3179_v26  ;;  %v5593_v13 = vadd.f32 %v5314_v59, %v3103_v45 }
 0x232   : > { %v4545_v60 = vpop.eup %4544  ;;  %3383 = vst.msk [vmem:[%s5413_s21 + $0x90] sm:$0xff] %vm3364_vm2, %v3346_v44  ;;  %v3344_v51 = vmul.f32 %v4543_v21, %v5447_v43  ;;  %4560 = vpow2.f32 %v3234_v41  ;;  %v3177_v30 = vsub.f32 0.0, %v5589_v62  ;;  %v4185_v43 = vadd.f32 %v3011_v24, %v5525_v55 }
 0x233   : > { %v4547_v34 = vpop.eup %4546  ;;  %v3347_v6 = vmul.f32 %v4545_v60, %v5450_v1  ;;  %4562 = vrcp.f32 %v3277_v58  ;;  %v3182_v17 = vsub.f32 0.0, %v5593_v13  ;;  %v4186_v1 = vadd.f32 %v4149_v19, %v5532_v2 }
 0x234   : > { %3381 = vst.msk [vmem:[%s5413_s21 + $0x80] sm:$0xff] %vm3364_vm2, %v3344_v51  ;;  %v3282_v32 = vadd.f32 1.0, %v4547_v34  ;;  %4564 = vpow2.f32 %v3244_v33  ;;  %v4549_v54 = vpop.eup %4548  ;;  %v3242_v23 = vmul.f32 1.442695, %v3177_v30  ;;  %v3101_v29 = vmul.f32 %v4185_v43, %v5309_v63 }
 0x235   : > { %3384 = vst.msk [vmem:[%s5413_s21 + $0x98] sm:$0xff] %vm3364_vm2, %v3347_v6  ;;  %4566 = vpow2.f32 %v3240_v27  ;;  %v3280_v56 = vadd.f32 1.0, %v4549_v54  ;;  %v3252_v16 = vmul.f32 1.442695, %v3182_v17  ;;  %v3104_v55 = vmul.f32 %v4186_v1, %v5309_v63 }
 0x236   : > { %4568 = vrcp.f32 %v3282_v32  ;;  %v5608_v2 = vadd.f32 %v5314_v59, %v3101_v29  ;;  %v3102_v18 = vmul.f32 %v4187_v14, %v5309_v63 }
 0x237   : > { %v4551_v22 = vpop.eup %4550  ;;  %4570 = vpow2.f32 %v3246_v9  ;;  %v5613_v41 = vadd.f32 %v5314_v59, %v3104_v55 }
 0x238   : > { %v4553_v20 = vpop.eup %4552  ;;  %v3345_v25 = vmul.f32 %v4551_v22, %v5455_v46  ;;  %4572 = vpow2.f32 %v3242_v23  ;;  %v3180_v46 = vsub.f32 0.0, %v5608_v2  ;;  %v5619_v36 = vadd.f32 %v5314_v59, %v3102_v18 }
 0x239   : > { %v4555_v38 = vpop.eup %4554  ;;  %v3350_v15 = vmul.f32 %v4553_v20, %v5482_v47  ;;  %4574 = vrcp.f32 %v3280_v56  ;;  %v3183_v28 = vsub.f32 0.0, %v5613_v41 }
 0x23a   : > { %v4557_v8 = vpop.eup %4556  ;;  %3382 = vst.msk [vmem:[%s5413_s21 + $0x88] sm:$0xff] %vm3364_vm2, %v3345_v25  ;;  %v3283_v24 = vadd.f32 1.0, %v4555_v38  ;;  %4576 = vpow2.f32 %v3252_v16  ;;  %v3248_v19 = vmul.f32 1.442695, %v3180_v46  ;;  %v3181_v61 = vsub.f32 0.0, %v5619_v36 }
 0x23b   : > { %v4559_v63 = vpop.eup %4558  ;;  %3387 = vst.msk [vmem:[%s5413_s21 + $0xb0] sm:$0xff] %vm3364_vm2, %v3350_v15  ;;  %v3348_v47 = vmul.f32 %v4557_v8, %v5493_v49  ;;  %v3254_v39 = vmul.f32 1.442695, %v3183_v28 }
 0x23c   : > { %v4561_v50 = vpop.eup %4560  ;;  %v3351_v5 = vmul.f32 %v4559_v63, %v5498_v12  ;;  %4578 = vrcp.f32 %v3283_v24  ;;  %v3250_v40 = vmul.f32 1.442695, %v3181_v61 }
 0x23d   : > { %v4563_v37 = vpop.eup %4562  ;;  %3385 = vst.msk [vmem:[%s5413_s21 + $0xa0] sm:$0xff] %vm3364_vm2, %v3348_v47  ;;  %v3281_v59 = vadd.f32 1.0, %v4561_v50  ;;  %4580 = vpow2.f32 %v3248_v19 }
 0x23e   : > { %v4565_v31 = vpop.eup %4564  ;;  %3388 = vst.msk [vmem:[%s5413_s21 + $0xb8] sm:$0xff] %vm3364_vm2, %v3351_v5  ;;  %v3349_v49 = vmul.f32 %v4563_v37, %v5501_v4 }
 0x23f   : > { %v4567_v52 = vpop.eup %4566  ;;  %4582 = vrcp.f32 %v3281_v59  ;;  %v3286_v12 = vadd.f32 1.0, %v4565_v31 }
 0x240   : > { %v4569_v33 = vpop.eup %4568  ;;  %3386 = vst.msk [vmem:[%s5413_s21 + $0xa8] sm:$0xff] %vm3364_vm2, %v3349_v49  ;;  %v3284_v7 = vadd.f32 1.0, %v4567_v52  ;;  %4584 = vpow2.f32 %v3254_v39 }
 0x241   : > { %v4571_v44 = vpop.eup %4570  ;;  %v3354_v35 = vmul.f32 %v4569_v33, %v5522_v0  ;;  %4586 = vrcp.f32 %v3286_v12 }
 0x242   : > { %v4573_v42 = vpop.eup %4572  ;;  %4588 = vrcp.f32 %v3284_v7  ;;  %v3287_v21 = vadd.f32 1.0, %v4571_v44 }
 0x243   : > { %v4575_v4 = vpop.eup %4574  ;;  %3391 = vst.msk [vmem:[%s5413_s21 + $0xd0] sm:$0xff] %vm3364_vm2, %v3354_v35  ;;  %v3285_v58 = vadd.f32 1.0, %v4573_v42  ;;  %4590 = vpow2.f32 %v3250_v40 }
 0x244   : > { %v4577_v26 = vpop.eup %4576  ;;  %v3352_v45 = vmul.f32 %v4575_v4, %v5539_v48  ;;  %4592 = vrcp.f32 %v3287_v21 }
 0x245   : > { %4594 = vrcp.f32 %v3285_v58  ;;  %v3290_v60 = vadd.f32 1.0, %v4577_v26 }
 0x246   : > { %v4579_v51 = vpop.eup %4578  ;;  %3389 = vst.msk [vmem:[%s5413_s21 + $0xc0] sm:$0xff] %vm3364_vm2, %v3352_v45 }
 0x247   : > { %v3355_v0 = vmul.f32 %v4579_v51, %v5544_v57  ;;  %4596 = vrcp.f32 %v3290_v60  ;;  %v4581_v27 = vpop.eup %4580 }
 0x248   : > { %v3288_v6 = vadd.f32 1.0, %v4581_v27 }
 0x249   : > { %v4583_v34 = vpop.eup %4582  ;;  %3392 = vst.msk [vmem:[%s5413_s21 + $0xd8] sm:$0xff] %vm3364_vm2, %v3355_v0 }
 0x24a   : > { %v4585_v9 = vpop.eup %4584  ;;  %v3353_v48 = vmul.f32 %v4583_v34, %v5549_v10  ;;  %4598 = vrcp.f32 %v3288_v6 }
 0x24b   : > { %v4587_v32 = vpop.eup %4586  ;;  %v3291_v30 = vadd.f32 1.0, %v4585_v9 }
 0x24c   : > { %v4589_v43 = vpop.eup %4588  ;;  %3390 = vst.msk [vmem:[%s5413_s21 + $0xc8] sm:$0xff] %vm3364_vm2, %v3353_v48  ;;  %v3358_v57 = vmul.f32 %v4587_v32, %v5564_v11 }
 0x24d   : > { %v4591_v17 = vpop.eup %4590  ;;  %v3356_v1 = vmul.f32 %v4589_v43, %v5574_v53  ;;  %4600 = vrcp.f32 %v3291_v30 }
 0x24e   : > { %v4593_v14 = vpop.eup %4592  ;;  %3395 = vst.msk [vmem:[%s5413_s21 + $0xf0] sm:$0xff] %vm3364_vm2, %v3358_v57  ;;  %v3289_v10 = vadd.f32 1.0, %v4591_v17 }
 0x24f   : > { %v4595_v54 = vpop.eup %4594  ;;  %3393 = vst.msk [vmem:[%s5413_s21 + $0xe0] sm:$0xff] %vm3364_vm2, %v3356_v1  ;;  %v3359_v23 = vmul.f32 %v4593_v14, %v5578_v3 }
 0x250   : > { %v3357_v29 = vmul.f32 %v4595_v54, %v5589_v62  ;;  %4602 = vrcp.f32 %v3289_v10 }
 0x251   : > { %v4597_v11 = vpop.eup %4596  ;;  %3396 = vst.msk [vmem:[%s5413_s21 + $0xf8] sm:$0xff] %vm3364_vm2, %v3359_v23 }
 0x252   : > { %3394 = vst.msk [vmem:[%s5413_s21 + $0xe8] sm:$0xff] %vm3364_vm2, %v3357_v29  ;;  %v3362_v53 = vmul.f32 %v4597_v11, %v5593_v13 }
 0x254   : > { %3399 = vst.msk [vmem:[%s5413_s21 + $0x110] sm:$0xff] %vm3364_vm2, %v3362_v53  ;;  %v4599_v22 = vpop.eup %4598 }
 0x255   : > { %v3360_v56 = vmul.f32 %v4599_v22, %v5608_v2 }
 0x257   : > { %v4601_v16 = vpop.eup %4600  ;;  %3397 = vst.msk [vmem:[%s5413_s21 + $0x100] sm:$0xff] %vm3364_vm2, %v3360_v56 }
 0x258   : > { %v3363_v3 = vmul.f32 %v4601_v16, %v5613_v41 }
 0x25a   : > { %v4603_v55 = vpop.eup %4602  ;;  %3400 = vst.msk [vmem:[%s5413_s21 + $0x118] sm:$0xff] %vm3364_vm2, %v3363_v3 }
 0x25b   : > { %v3361_v62 = vmul.f32 %v4603_v55, %v5619_v36 }
 0x25d   : > { %3398 = vst.msk [vmem:[%s5413_s21 + $0x108] sm:$0xff] %vm3364_vm2, %v3361_v62 }
 0x25e PF: > { %s14_s15 = sadd.s32 1, %s4610_s15  }
 0x25f   : > { %p11_p4 = scmp.ge.s32.totalorder %s14_s15, 4  }
 0x261   :  { %13 = sbr.rel (!%p11_p4) target bundleno = 1 (0x1), region = 74 }

</bundles_post_ra>
